<compile_context>
chip_gen: v7x
topology: tpu7x:2x2x1
jax: 0.10.0
libtpu: 0.0.40
codegen_flags: <defaults>
</compile_context>

<pallas_src>
import functools

import jax
import jax.numpy as jnp
from jax.experimental import pallas as pl
from jax.experimental.pallas import tpu as pltpu

_LANE = 128
_SUBLANE = 8


def _round_up(n, m):
    return ((n + m - 1) // m) * m


def _vmem_budget_bytes():
    """~75% of per-TensorCore VMEM, generation aware (v5e/v6e: 128 MiB -> 96 MiB,
    v7x: 64 MiB -> 48 MiB). Falls back to the v7x budget if the query fails."""
    cap = 64 << 20
    try:
        cap = int(pltpu.get_tpu_info().vmem_capacity_bytes)
    except Exception:
        pass
    return (cap * 3) // 4


def _resident_spec(shape, single_buffer):
    """Grid-invariant input spec (constant index_map -> fetched once).

    With single_buffer=True the buffer is not double-allocated (Buffered(1)),
    halving the VMEM held by the resident parameter set."""
    if single_buffer:
        return pl.BlockSpec(shape, lambda i: (0, 0), pipeline_mode=pl.Buffered(1))
    return pl.BlockSpec(shape, lambda i: (0, 0))


# --------------------------------------------------------------------------- #
# Kernels
# --------------------------------------------------------------------------- #
def _mlp_kernel(n_hidden_layers, *refs):
    """Whole-MLP forward for one batch tile; all layers resident in VMEM.

    refs = (x_ref,
            w0_ref, b0_ref,                      # first Linear (no ReLU after it)
            [wi_ref, bi_ref] * n_hidden_layers,  # Linear + ReLU blocks
            wout_ref, bout_ref,                  # output Linear (no ReLU)
            out_ref)

    Matmul operands are the weights' dtype (bf16 by default); accumulation,
    bias-add and ReLU are f32; the inter-layer activation is staged back in
    the compute dtype to reduce VMEM vector load/store traffic.
    """
    x_ref = refs[0]
    out_ref = refs[-1]
    p = refs[1:-1]

    w_ref, b_ref = p[0], p[1]
    compute_dtype = w_ref.dtype
    acc = jnp.dot(x_ref[...], w_ref[...],
                  preferred_element_type=jnp.float32) + b_ref[...]
    h = acc.astype(compute_dtype)          # first Linear: no activation

    idx = 2
    for _ in range(n_hidden_layers):
        w_ref, b_ref = p[idx], p[idx + 1]
        idx += 2
        acc = jnp.dot(h, w_ref[...],
                      preferred_element_type=jnp.float32) + b_ref[...]
        h = jnp.maximum(acc, 0.0).astype(compute_dtype)

    w_ref, b_ref = p[idx], p[idx + 1]
    acc = jnp.dot(h, w_ref[...],
                  preferred_element_type=jnp.float32) + b_ref[...]
    out_ref[...] = acc.astype(out_ref.dtype)


def _linear_kernel(apply_relu, x_ref, w_ref, b_ref, out_ref):
    """One Linear (+ optional ReLU); fallback path for very large parameter sets."""
    acc = jnp.dot(x_ref[...], w_ref[...],
                  preferred_element_type=jnp.float32) + b_ref[...]
    if apply_relu:
        acc = jnp.maximum(acc, 0.0)
    out_ref[...] = acc.astype(out_ref.dtype)


# --------------------------------------------------------------------------- #
# Parameter preparation (hoisted off the forward hot path)
# --------------------------------------------------------------------------- #
def prepare_params(params, compute_dtype=jnp.bfloat16):
    """Pad / cast the Generator_AHB parameters once.

    params: list of (W, b) pairs; W is [in_features, out_features], b is
      [out_features] or [1, out_features]. Order: first layer, hidden
      layers..., output layer.
    Returns a list of (W_padded[in_p, out_p] in compute_dtype,
                       b_padded[1, out_p] in float32) with every feature dim
    padded to a multiple of 128 lanes (zero padding is exact through the
    bias-add and ReLU; padded output lanes are sliced off in the wrapper).
    """
    prepared = []
    for (W, b) in params:
        fan_in, fan_out = W.shape
        fi_p = _round_up(fan_in, _LANE)
        fo_p = _round_up(fan_out, _LANE)
        W_p = jnp.pad(jnp.asarray(W, compute_dtype),
                      ((0, fi_p - fan_in), (0, fo_p - fan_out)))
        b_p = jnp.pad(jnp.reshape(jnp.asarray(b, jnp.float32), (1, fan_out)),
                      ((0, 0), (0, fo_p - fan_out)))
        prepared.append((W_p, b_p))
    return prepared


# --------------------------------------------------------------------------- #
# Forward wrappers
# --------------------------------------------------------------------------- #
def _forward_resident(x_p, prepared_params, block_b, out_dtype, vmem_limit,
                      single_buffer):
    """Whole MLP in one pallas_call; parameters resident across the batch grid."""
    B_pad, in_p = x_p.shape
    out_p = prepared_params[-1][0].shape[1]
    n_hidden_layers = len(prepared_params) - 2

    flat = [x_p]
    in_specs = [pl.BlockSpec((block_b, in_p), lambda i: (i, 0))]
    for (W_p, b_p) in prepared_params:
        fi_p, fo_p = W_p.shape
        in_specs.append(_resident_spec((fi_p, fo_p), single_buffer))
        in_specs.append(_resident_spec((1, fo_p), single_buffer))
        flat.append(W_p)
        flat.append(b_p)

    # TODO(synk): verify the batch grid actually splits across both v7x
    # TensorCores with "parallel"; if not, switch to pltpu.CORE_PARALLEL /
    # an explicit core axis via pl.core_map.
    return pl.pallas_call(
        functools.partial(_mlp_kernel, n_hidden_layers),
        out_shape=jax.ShapeDtypeStruct((B_pad, out_p), out_dtype),
        grid=(B_pad // block_b,),
        in_specs=in_specs,
        out_specs=pl.BlockSpec((block_b, out_p), lambda i: (i, 0)),
        compiler_params=pltpu.CompilerParams(
            dimension_semantics=("parallel",),
            vmem_limit_bytes=vmem_limit,
        ),
    )(*flat)


def _forward_per_layer(x_p, prepared_params, block_b, out_dtype, vmem_cap,
                       single_buffer):
    """Fallback: one pallas_call per layer (activations round-trip HBM) for
    parameter sets too large to keep resident in a single kernel's VMEM."""
    # TODO(synk): K-tile / stream the weight via pltpu.emit_pipeline for single
    # layers that are themselves larger than the VMEM budget.
    B_pad = x_p.shape[0]
    n = len(prepared_params)
    h = x_p
    for li, (W_p, b_p) in enumerate(prepared_params):
        fi_p, fo_p = W_p.shape
        is_last = li == n - 1
        apply_relu = 0 < li < n - 1          # ReLU only after the hidden Linears
        o_dtype = out_dtype if is_last else h.dtype
        need = (2 * block_b * fi_p * h.dtype.itemsize
                + 2 * block_b * fo_p * jnp.dtype(o_dtype).itemsize
                + (1 if single_buffer else 2)
                * (W_p.size * W_p.dtype.itemsize + b_p.size * b_p.dtype.itemsize)
                + 2 * block_b * fo_p * 4)    # f32 accumulator temporaries
        vmem_limit = int(min(max(need + (2 << 20), 8 << 20), vmem_cap))
        h = pl.pallas_call(
            functools.partial(_linear_kernel, apply_relu),
            out_shape=jax.ShapeDtypeStruct((B_pad, fo_p), o_dtype),
            grid=(B_pad // block_b,),
            in_specs=[pl.BlockSpec((block_b, fi_p), lambda i: (i, 0)),
                      _resident_spec((fi_p, fo_p), single_buffer),
                      _resident_spec((1, fo_p), single_buffer)],
            out_specs=pl.BlockSpec((block_b, fo_p), lambda i: (i, 0)),
            compiler_params=pltpu.CompilerParams(
                dimension_semantics=("parallel",),
                vmem_limit_bytes=vmem_limit,
            ),
        )(h, W_p, b_p)
    return h


def generator_ahb_forward(x, prepared_params, *, block_b=None,
                          force_per_layer=False):
    """Generator_AHB forward: Linear -> [Linear, ReLU]*(n_layer-1) -> Linear.

    Args:
      x: [batch, input_dim] float32.
      prepared_params: output of prepare_params() (padded, compute-dtype W).
      block_b: batch tile size (rounded up to a multiple of 8). Defaults to a
        tile that yields >= 2 grid steps (v7x megacore) up to 1024 rows.
      force_per_layer: force the per-layer fallback path (for testing).
    """
    B, input_dim = x.shape
    out_dtype = x.dtype
    compute_dtype = prepared_params[0][0].dtype
    cd_size = jnp.dtype(compute_dtype).itemsize
    out_size = jnp.dtype(out_dtype).itemsize

    in_p = prepared_params[0][0].shape[0]
    out_p = prepared_params[-1][0].shape[1]
    max_feat_p = max(in_p, *(W.shape[1] for W, _ in prepared_params))
    param_bytes = sum(W.size * W.dtype.itemsize + b.size * b.dtype.itemsize
                      for W, b in prepared_params)

    # ---- Batch tiling: multiple of 8 sublanes; >= 2 grid steps when the batch
    #      allows so both v7x TensorCores can be given work.
    b8 = _round_up(max(B, 1), _SUBLANE)
    if block_b is None:
        block_b = min(1024, b8)
        if b8 >= 2 * _SUBLANE:
            block_b = min(block_b, _round_up((b8 + 1) // 2, _SUBLANE))
    block_b = max(_SUBLANE, _round_up(block_b, _SUBLANE))
    B_pad = _round_up(B, block_b)

    # ---- Lane/batch padding of the activations (zero padding is exact).
    x_p = jnp.pad(x.astype(compute_dtype),
                  ((0, B_pad - B), (0, in_p - input_dim)))

    vmem_cap = _vmem_budget_bytes()
    single_buffer_ok = hasattr(pl, "Buffered")

    def resident_need(single_buffer):
        # Actual buffer counts: double-buffered x/out tiles, 1x (or 2x) params,
        # live f32 accumulator + compute-dtype staged activation.
        return (2 * block_b * in_p * cd_size
                + 2 * block_b * out_p * out_size
                + (1 if single_buffer else 2) * param_bytes
                + 2 * block_b * max_feat_p * (4 + cd_size))

    def run(single_buffer):
        need = resident_need(single_buffer)
        fits_resident = (not force_per_layer) and (need + (2 << 20) <= vmem_cap)
        if not fits_resident:
            return _forward_per_layer(x_p, prepared_params, block_b, out_dtype,
                                      vmem_cap, single_buffer)
        vmem_limit = int(min(max(need + (2 << 20), 8 << 20), vmem_cap))
        return _forward_resident(x_p, prepared_params, block_b, out_dtype,
                                 vmem_limit, single_buffer)

    if single_buffer_ok:
        try:
            out_padded = run(True)
        except Exception:
            # pl.Buffered(1) rejected on this JAX/Mosaic rev -> default buffering.
            out_padded = run(False)
    else:
        out_padded = run(False)

    # Slice off the batch and lane padding.
    return out_padded[:B, :input_dim]


# --------------------------------------------------------------------------- #
# Reference + test harness
# --------------------------------------------------------------------------- #
def init_params(key, input_dim, n_layer, n_hidden, dtype=jnp.float32):
    """Deterministic synthetic parameters matching Generator_AHB's shapes."""
    dims = [(input_dim, n_hidden)]
    dims += [(n_hidden, n_hidden)] * (n_layer - 1)
    dims += [(n_hidden, input_dim)]

    params = []
    for (fan_in, fan_out) in dims:
        key, kw, kb = jax.random.split(key, 3)
        bound = 1.0 / jnp.sqrt(jnp.asarray(fan_in, dtype=jnp.float32))
        W = jax.random.uniform(kw, (fan_in, fan_out), dtype, -bound, bound)
        b = jax.random.uniform(kb, (1, fan_out), dtype, -bound, bound)
        params.append((W, b))
    return params


def reference_forward(x, params):
    """Plain-JAX reference identical to the PyTorch Sequential semantics."""
    W0, b0 = params[0]
    h = x @ W0 + b0
    for (W, b) in params[1:-1]:
        h = jnp.maximum(h @ W + b, 0.0)
    Wn, bn = params[-1]
    return h @ Wn + bn


if __name__ == "__main__":
    # Small shapes consistent with the module: x is [batch, input_dim].
    batch, input_dim, n_layer, n_hidden = 64, 16, 3, 32

    key = jax.random.PRNGKey(0)
    key, kx = jax.random.split(key)
    x = jax.random.normal(kx, (batch, input_dim), jnp.float32)
    params = init_params(key, input_dim, n_layer, n_hidden)

    ref = reference_forward(x, params)

    # Exact f32 compute path (tight tolerance), explicit small batch tile.
    params_f32 = prepare_params(params, compute_dtype=jnp.float32)
    out_f32 = jax.block_until_ready(
        generator_ahb_forward(x, params_f32, block_b=16))
    assert out_f32.shape == (batch, input_dim)
    assert jnp.allclose(out_f32, ref, atol=1e-5, rtol=1e-5)

    # Default path: bf16 MXU operands, f32 accumulate/bias/ReLU, auto tile
    # (batch=64 -> two 32-row grid steps).
    params_bf16 = prepare_params(params)  # bf16 by default
    out_bf16 = jax.block_until_ready(generator_ahb_forward(x, params_bf16))
    assert out_bf16.shape == (batch, input_dim)
    assert jnp.allclose(out_bf16, ref, atol=1e-1, rtol=1e-1)

    # Per-layer fallback path (used when the params don't fit resident in VMEM).
    out_pl = jax.block_until_ready(
        generator_ahb_forward(x, params_f32, block_b=16, force_per_layer=True))
    assert out_pl.shape == (batch, input_dim)
    assert jnp.allclose(out_pl, ref, atol=1e-5, rtol=1e-5)

    # Ragged / default-tile path (batch not a multiple of the tile).
    out_small = jax.block_until_ready(generator_ahb_forward(x[:10], params_f32))
    assert jnp.allclose(out_small, ref[:10], atol=1e-5, rtol=1e-5)

    print("KERNEL_OK")
</pallas_src>

<mosaic_0001>
module attributes {stable_mosaic.version = 11 : i64} {
  func.func @_mlp_kernel(%arg0: i32, %arg1: memref<16x128xf32, #tpu.memory_space<vmem>>, %arg2: memref<128x128xf32, #tpu.memory_space<vmem>>, %arg3: memref<1x128xf32, #tpu.memory_space<vmem>>, %arg4: memref<128x128xf32, #tpu.memory_space<vmem>>, %arg5: memref<1x128xf32, #tpu.memory_space<vmem>>, %arg6: memref<128x128xf32, #tpu.memory_space<vmem>>, %arg7: memref<1x128xf32, #tpu.memory_space<vmem>>, %arg8: memref<128x128xf32, #tpu.memory_space<vmem>>, %arg9: memref<1x128xf32, #tpu.memory_space<vmem>>, %arg10: memref<16x128xf32, #tpu.memory_space<vmem>>) attributes {dimension_semantics = [#tpu.dimension_semantics<parallel>], iteration_bounds = array<i64: 4>, scalar_prefetch = 0 : i64, scratch_operands = 0 : i64, tpu.core_type = #tpu.core_type<tc>, window_params = [{transform_indices = @transform_0, window_bounds = array<i64: 16, 128>}, {pipeline_mode = #tpu.pipeline_mode<synchronous>, transform_indices = @transform_1, window_bounds = array<i64: 128, 128>}, {pipeline_mode = #tpu.pipeline_mode<synchronous>, transform_indices = @transform_2, window_bounds = array<i64: 1, 128>}, {pipeline_mode = #tpu.pipeline_mode<synchronous>, transform_indices = @transform_3, window_bounds = array<i64: 128, 128>}, {pipeline_mode = #tpu.pipeline_mode<synchronous>, transform_indices = @transform_4, window_bounds = array<i64: 1, 128>}, {pipeline_mode = #tpu.pipeline_mode<synchronous>, transform_indices = @transform_5, window_bounds = array<i64: 128, 128>}, {pipeline_mode = #tpu.pipeline_mode<synchronous>, transform_indices = @transform_6, window_bounds = array<i64: 1, 128>}, {pipeline_mode = #tpu.pipeline_mode<synchronous>, transform_indices = @transform_7, window_bounds = array<i64: 128, 128>}, {pipeline_mode = #tpu.pipeline_mode<synchronous>, transform_indices = @transform_8, window_bounds = array<i64: 1, 128>}, {transform_indices = @transform_9, window_bounds = array<i64: 16, 128>}]} {
    %c0 = arith.constant 0 : index
    %c0_0 = arith.constant 0 : index
    %0 = vector.load %arg1[%c0, %c0_0] : memref<16x128xf32, #tpu.memory_space<vmem>>, vector<16x128xf32>
    %c0_1 = arith.constant 0 : index
    %c0_2 = arith.constant 0 : index
    %1 = vector.load %arg2[%c0_1, %c0_2] : memref<128x128xf32, #tpu.memory_space<vmem>>, vector<128x128xf32>
    %cst = arith.constant dense<0.000000e+00> : vector<16x128xf32>
    %2 = tpu.matmul %0, %1, %cst {dimension_numbers = #tpu.dot_dimension_numbers<[1], [0], [0], [1], [0, 0, 1, 1], [], []>} : vector<16x128xf32>, vector<128x128xf32>, vector<16x128xf32> -> vector<16x128xf32>
    %c0_3 = arith.constant 0 : index
    %c0_4 = arith.constant 0 : index
    %3 = vector.load %arg3[%c0_3, %c0_4] : memref<1x128xf32, #tpu.memory_space<vmem>>, vector<1x128xf32>
    %4 = vector.broadcast %3 : vector<1x128xf32> to vector<16x128xf32>
    %5 = arith.addf %2, %4 : vector<16x128xf32>
    %c0_5 = arith.constant 0 : index
    %c0_6 = arith.constant 0 : index
    %6 = vector.load %arg4[%c0_5, %c0_6] : memref<128x128xf32, #tpu.memory_space<vmem>>, vector<128x128xf32>
    %cst_7 = arith.constant dense<0.000000e+00> : vector<16x128xf32>
    %7 = tpu.matmul %5, %6, %cst_7 {dimension_numbers = #tpu.dot_dimension_numbers<[1], [0], [0], [1], [0, 0, 1, 1], [], []>} : vector<16x128xf32>, vector<128x128xf32>, vector<16x128xf32> -> vector<16x128xf32>
    %c0_8 = arith.constant 0 : index
    %c0_9 = arith.constant 0 : index
    %8 = vector.load %arg5[%c0_8, %c0_9] : memref<1x128xf32, #tpu.memory_space<vmem>>, vector<1x128xf32>
    %9 = vector.broadcast %8 : vector<1x128xf32> to vector<16x128xf32>
    %10 = arith.addf %7, %9 : vector<16x128xf32>
    %cst_10 = arith.constant 0.000000e+00 : f32
    %11 = vector.broadcast %cst_10 : f32 to vector<16x128xf32>
    %12 = arith.maximumf %10, %11 : vector<16x128xf32>
    %c0_11 = arith.constant 0 : index
    %c0_12 = arith.constant 0 : index
    %13 = vector.load %arg6[%c0_11, %c0_12] : memref<128x128xf32, #tpu.memory_space<vmem>>, vector<128x128xf32>
    %cst_13 = arith.constant dense<0.000000e+00> : vector<16x128xf32>
    %14 = tpu.matmul %12, %13, %cst_13 {dimension_numbers = #tpu.dot_dimension_numbers<[1], [0], [0], [1], [0, 0, 1, 1], [], []>} : vector<16x128xf32>, vector<128x128xf32>, vector<16x128xf32> -> vector<16x128xf32>
    %c0_14 = arith.constant 0 : index
    %c0_15 = arith.constant 0 : index
    %15 = vector.load %arg7[%c0_14, %c0_15] : memref<1x128xf32, #tpu.memory_space<vmem>>, vector<1x128xf32>
    %16 = vector.broadcast %15 : vector<1x128xf32> to vector<16x128xf32>
    %17 = arith.addf %14, %16 : vector<16x128xf32>
    %cst_16 = arith.constant 0.000000e+00 : f32
    %18 = vector.broadcast %cst_16 : f32 to vector<16x128xf32>
    %19 = arith.maximumf %17, %18 : vector<16x128xf32>
    %c0_17 = arith.constant 0 : index
    %c0_18 = arith.constant 0 : index
    %20 = vector.load %arg8[%c0_17, %c0_18] : memref<128x128xf32, #tpu.memory_space<vmem>>, vector<128x128xf32>
    %cst_19 = arith.constant dense<0.000000e+00> : vector<16x128xf32>
    %21 = tpu.matmul %19, %20, %cst_19 {dimension_numbers = #tpu.dot_dimension_numbers<[1], [0], [0], [1], [0, 0, 1, 1], [], []>} : vector<16x128xf32>, vector<128x128xf32>, vector<16x128xf32> -> vector<16x128xf32>
    %c0_20 = arith.constant 0 : index
    %c0_21 = arith.constant 0 : index
    %22 = vector.load %arg9[%c0_20, %c0_21] : memref<1x128xf32, #tpu.memory_space<vmem>>, vector<1x128xf32>
    %23 = vector.broadcast %22 : vector<1x128xf32> to vector<16x128xf32>
    %24 = arith.addf %21, %23 : vector<16x128xf32>
    %c0_22 = arith.constant 0 : index
    %c0_23 = arith.constant 0 : index
    %25 = vector.load %arg10[%c0_22, %c0_23] : memref<16x128xf32, #tpu.memory_space<vmem>>, vector<16x128xf32>
    tpu.vector_store %arg10[%c0_22, %c0_23], %24 {strides = array<i32>} : memref<16x128xf32, #tpu.memory_space<vmem>>, vector<16x128xf32>,
    return
  }
  func.func @transform_0(%arg0: i32) -> (i32, i32) {
    %c0_i32 = arith.constant 0 : i32
    %c0_i32_0 = arith.constant 0 : i32
    return %arg0, %c0_i32 : i32, i32
  }
  func.func @transform_1(%arg0: i32) -> (i32, i32) {
    %c0_i32 = arith.constant 0 : i32
    %c0_i32_0 = arith.constant 0 : i32
    %c0_i32_1 = arith.constant 0 : i32
    return %c0_i32, %c0_i32_0 : i32, i32
  }
  func.func @transform_2(%arg0: i32) -> (i32, i32) {
    %c0_i32 = arith.constant 0 : i32
    %c0_i32_0 = arith.constant 0 : i32
    %c0_i32_1 = arith.constant 0 : i32
    return %c0_i32, %c0_i32_0 : i32, i32
  }
  func.func @transform_3(%arg0: i32) -> (i32, i32) {
    %c0_i32 = arith.constant 0 : i32
    %c0_i32_0 = arith.constant 0 : i32
    %c0_i32_1 = arith.constant 0 : i32
    return %c0_i32, %c0_i32_0 : i32, i32
  }
  func.func @transform_4(%arg0: i32) -> (i32, i32) {
    %c0_i32 = arith.constant 0 : i32
    %c0_i32_0 = arith.constant 0 : i32
    %c0_i32_1 = arith.constant 0 : i32
    return %c0_i32, %c0_i32_0 : i32, i32
  }
  func.func @transform_5(%arg0: i32) -> (i32, i32) {
    %c0_i32 = arith.constant 0 : i32
    %c0_i32_0 = arith.constant 0 : i32
    %c0_i32_1 = arith.constant 0 : i32
    return %c0_i32, %c0_i32_0 : i32, i32
  }
  func.func @transform_6(%arg0: i32) -> (i32, i32) {
    %c0_i32 = arith.constant 0 : i32
    %c0_i32_0 = arith.constant 0 : i32
    %c0_i32_1 = arith.constant 0 : i32
    return %c0_i32, %c0_i32_0 : i32, i32
  }
  func.func @transform_7(%arg0: i32) -> (i32, i32) {
    %c0_i32 = arith.constant 0 : i32
    %c0_i32_0 = arith.constant 0 : i32
    %c0_i32_1 = arith.constant 0 : i32
    return %c0_i32, %c0_i32_0 : i32, i32
  }
  func.func @transform_8(%arg0: i32) -> (i32, i32) {
    %c0_i32 = arith.constant 0 : i32
    %c0_i32_0 = arith.constant 0 : i32
    %c0_i32_1 = arith.constant 0 : i32
    return %c0_i32, %c0_i32_0 : i32, i32
  }
  func.func @transform_9(%arg0: i32) -> (i32, i32) {
    %c0_i32 = arith.constant 0 : i32
    %c0_i32_0 = arith.constant 0 : i32
    return %arg0, %c0_i32 : i32, i32
  }
}

module attributes {stable_mosaic.version = 11 : i64} {
  func.func @_mlp_kernel(%arg0: i32, %arg1: memref<16x128xf32, #tpu.memory_space<vmem>>, %arg2: memref<128x128xf32, #tpu.memory_space<vmem>>, %arg3: memref<1x128xf32, #tpu.memory_space<vmem>>, %arg4: memref<128x128xf32, #tpu.memory_space<vmem>>, %arg5: memref<1x128xf32, #tpu.memory_space<vmem>>, %arg6: memref<128x128xf32, #tpu.memory_space<vmem>>, %arg7: memref<1x128xf32, #tpu.memory_space<vmem>>, %arg8: memref<128x128xf32, #tpu.memory_space<vmem>>, %arg9: memref<1x128xf32, #tpu.memory_space<vmem>>, %arg10: memref<16x128xf32, #tpu.memory_space<vmem>>) attributes {dimension_semantics = [#tpu.dimension_semantics<parallel>], iteration_bounds = array<i64: 4>, scalar_prefetch = 0 : i64, scratch_operands = 0 : i64, tpu.core_type = #tpu.core_type<tc>, window_params = [{transform_indices = @transform_0, window_bounds = array<i64: 16, 128>}, {pipeline_mode = #tpu.pipeline_mode<synchronous>, transform_indices = @transform_1, window_bounds = array<i64: 128, 128>}, {pipeline_mode = #tpu.pipeline_mode<synchronous>, transform_indices = @transform_2, window_bounds = array<i64: 1, 128>}, {pipeline_mode = #tpu.pipeline_mode<synchronous>, transform_indices = @transform_3, window_bounds = array<i64: 128, 128>}, {pipeline_mode = #tpu.pipeline_mode<synchronous>, transform_indices = @transform_4, window_bounds = array<i64: 1, 128>}, {pipeline_mode = #tpu.pipeline_mode<synchronous>, transform_indices = @transform_5, window_bounds = array<i64: 128, 128>}, {pipeline_mode = #tpu.pipeline_mode<synchronous>, transform_indices = @transform_6, window_bounds = array<i64: 1, 128>}, {pipeline_mode = #tpu.pipeline_mode<synchronous>, transform_indices = @transform_7, window_bounds = array<i64: 128, 128>}, {pipeline_mode = #tpu.pipeline_mode<synchronous>, transform_indices = @transform_8, window_bounds = array<i64: 1, 128>}, {transform_indices = @transform_9, window_bounds = array<i64: 16, 128>}]} {
    %c0 = arith.constant 0 : index
    %c0_0 = arith.constant 0 : index
    %0 = vector.load %arg1[%c0, %c0_0] : memref<16x128xf32, #tpu.memory_space<vmem>>, vector<16x128xf32>
    %c0_1 = arith.constant 0 : index
    %c0_2 = arith.constant 0 : index
    %1 = vector.load %arg2[%c0_1, %c0_2] : memref<128x128xf32, #tpu.memory_space<vmem>>, vector<128x128xf32>
    %cst = arith.constant dense<0.000000e+00> : vector<16x128xf32>
    %2 = tpu.matmul %0, %1, %cst {dimension_numbers = #tpu.dot_dimension_numbers<[1], [0], [0], [1], [0, 0, 1, 1], [], []>} : vector<16x128xf32>, vector<128x128xf32>, vector<16x128xf32> -> vector<16x128xf32>
    %c0_3 = arith.constant 0 : index
    %c0_4 = arith.constant 0 : index
    %3 = vector.load %arg3[%c0_3, %c0_4] : memref<1x128xf32, #tpu.memory_space<vmem>>, vector<1x128xf32>
    %4 = vector.broadcast %3 : vector<1x128xf32> to vector<16x128xf32>
    %5 = arith.addf %2, %4 : vector<16x128xf32>
    %c0_5 = arith.constant 0 : index
    %c0_6 = arith.constant 0 : index
    %6 = vector.load %arg4[%c0_5, %c0_6] : memref<128x128xf32, #tpu.memory_space<vmem>>, vector<128x128xf32>
    %cst_7 = arith.constant dense<0.000000e+00> : vector<16x128xf32>
    %7 = tpu.matmul %5, %6, %cst_7 {dimension_numbers = #tpu.dot_dimension_numbers<[1], [0], [0], [1], [0, 0, 1, 1], [], []>} : vector<16x128xf32>, vector<128x128xf32>, vector<16x128xf32> -> vector<16x128xf32>
    %c0_8 = arith.constant 0 : index
    %c0_9 = arith.constant 0 : index
    %8 = vector.load %arg5[%c0_8, %c0_9] : memref<1x128xf32, #tpu.memory_space<vmem>>, vector<1x128xf32>
    %9 = vector.broadcast %8 : vector<1x128xf32> to vector<16x128xf32>
    %10 = arith.addf %7, %9 : vector<16x128xf32>
    %cst_10 = arith.constant 0.000000e+00 : f32
    %11 = vector.broadcast %cst_10 : f32 to vector<16x128xf32>
    %12 = arith.maximumf %10, %11 : vector<16x128xf32>
    %c0_11 = arith.constant 0 : index
    %c0_12 = arith.constant 0 : index
    %13 = vector.load %arg6[%c0_11, %c0_12] : memref<128x128xf32, #tpu.memory_space<vmem>>, vector<128x128xf32>
    %cst_13 = arith.constant dense<0.000000e+00> : vector<16x128xf32>
    %14 = tpu.matmul %12, %13, %cst_13 {dimension_numbers = #tpu.dot_dimension_numbers<[1], [0], [0], [1], [0, 0, 1, 1], [], []>} : vector<16x128xf32>, vector<128x128xf32>, vector<16x128xf32> -> vector<16x128xf32>
    %c0_14 = arith.constant 0 : index
    %c0_15 = arith.constant 0 : index
    %15 = vector.load %arg7[%c0_14, %c0_15] : memref<1x128xf32, #tpu.memory_space<vmem>>, vector<1x128xf32>
    %16 = vector.broadcast %15 : vector<1x128xf32> to vector<16x128xf32>
    %17 = arith.addf %14, %16 : vector<16x128xf32>
    %cst_16 = arith.constant 0.000000e+00 : f32
    %18 = vector.broadcast %cst_16 : f32 to vector<16x128xf32>
    %19 = arith.maximumf %17, %18 : vector<16x128xf32>
    %c0_17 = arith.constant 0 : index
    %c0_18 = arith.constant 0 : index
    %20 = vector.load %arg8[%c0_17, %c0_18] : memref<128x128xf32, #tpu.memory_space<vmem>>, vector<128x128xf32>
    %cst_19 = arith.constant dense<0.000000e+00> : vector<16x128xf32>
    %21 = tpu.matmul %19, %20, %cst_19 {dimension_numbers = #tpu.dot_dimension_numbers<[1], [0], [0], [1], [0, 0, 1, 1], [], []>} : vector<16x128xf32>, vector<128x128xf32>, vector<16x128xf32> -> vector<16x128xf32>
    %c0_20 = arith.constant 0 : index
    %c0_21 = arith.constant 0 : index
    %22 = vector.load %arg9[%c0_20, %c0_21] : memref<1x128xf32, #tpu.memory_space<vmem>>, vector<1x128xf32>
    %23 = vector.broadcast %22 : vector<1x128xf32> to vector<16x128xf32>
    %24 = arith.addf %21, %23 : vector<16x128xf32>
    %c0_22 = arith.constant 0 : index
    %c0_23 = arith.constant 0 : index
    %25 = vector.load %arg10[%c0_22, %c0_23] : memref<16x128xf32, #tpu.memory_space<vmem>>, vector<16x128xf32>
    tpu.vector_store %arg10[%c0_22, %c0_23], %24 {strides = array<i32>} : memref<16x128xf32, #tpu.memory_space<vmem>>, vector<16x128xf32>,
    return
  }
  func.func @transform_0(%arg0: i32) -> (i32, i32) {
    %c0_i32 = arith.constant 0 : i32
    %c0_i32_0 = arith.constant 0 : i32
    return %arg0, %c0_i32 : i32, i32
  }
  func.func @transform_1(%arg0: i32) -> (i32, i32) {
    %c0_i32 = arith.constant 0 : i32
    %c0_i32_0 = arith.constant 0 : i32
    %c0_i32_1 = arith.constant 0 : i32
    return %c0_i32, %c0_i32_0 : i32, i32
  }
  func.func @transform_2(%arg0: i32) -> (i32, i32) {
    %c0_i32 = arith.constant 0 : i32
    %c0_i32_0 = arith.constant 0 : i32
    %c0_i32_1 = arith.constant 0 : i32
    return %c0_i32, %c0_i32_0 : i32, i32
  }
  func.func @transform_3(%arg0: i32) -> (i32, i32) {
    %c0_i32 = arith.constant 0 : i32
    %c0_i32_0 = arith.constant 0 : i32
    %c0_i32_1 = arith.constant 0 : i32
    return %c0_i32, %c0_i32_0 : i32, i32
  }
  func.func @transform_4(%arg0: i32) -> (i32, i32) {
    %c0_i32 = arith.constant 0 : i32
    %c0_i32_0 = arith.constant 0 : i32
    %c0_i32_1 = arith.constant 0 : i32
    return %c0_i32, %c0_i32_0 : i32, i32
  }
  func.func @transform_5(%arg0: i32) -> (i32, i32) {
    %c0_i32 = arith.constant 0 : i32
    %c0_i32_0 = arith.constant 0 : i32
    %c0_i32_1 = arith.constant 0 : i32
    return %c0_i32, %c0_i32_0 : i32, i32
  }
  func.func @transform_6(%arg0: i32) -> (i32, i32) {
    %c0_i32 = arith.constant 0 : i32
    %c0_i32_0 = arith.constant 0 : i32
    %c0_i32_1 = arith.constant 0 : i32
    return %c0_i32, %c0_i32_0 : i32, i32
  }
  func.func @transform_7(%arg0: i32) -> (i32, i32) {
    %c0_i32 = arith.constant 0 : i32
    %c0_i32_0 = arith.constant 0 : i32
    %c0_i32_1 = arith.constant 0 : i32
    return %c0_i32, %c0_i32_0 : i32, i32
  }
  func.func @transform_8(%arg0: i32) -> (i32, i32) {
    %c0_i32 = arith.constant 0 : i32
    %c0_i32_0 = arith.constant 0 : i32
    %c0_i32_1 = arith.constant 0 : i32
    return %c0_i32, %c0_i32_0 : i32, i32
  }
  func.func @transform_9(%arg0: i32) -> (i32, i32) {
    %c0_i32 = arith.constant 0 : i32
    %c0_i32_0 = arith.constant 0 : i32
    return %arg0, %c0_i32 : i32, i32
  }
}

</mosaic_0001>

<bundles_post_ra>
// kernel: tpu_custom_call.1
= control target key start
LH: loop header
LB: loop body
LE: loop exit
PB: predicated region body
PF: predicated region fallthrough
CT: control target
= control target key end

     0   :  { %s1983_s0 = inlined_call_operand.hbm [shape: f32[64,128], index: 0, kind: input, shape index: {}]   ;;  %s1984_s1 = inlined_call_operand.hbm [shape: f32[128,128], index: 1, kind: input, shape index: {}]   ;;  %s1985_s2 = inlined_call_operand.vmem [shape: f32[1,128], index: 2, kind: input, shape index: {}]   ;;  %s1986_s3 = inlined_call_operand.hbm [shape: f32[128,128], index: 3, kind: input, shape index: {}]   ;;  %s1987_s4 = inlined_call_operand.vmem [shape: f32[1,128], index: 4, kind: input, shape index: {}]   ;;  %s1988_s5 = inlined_call_operand.hbm [shape: f32[128,128], index: 5, kind: input, shape index: {}]   ;;  %s1989_s6 = inlined_call_operand.vmem [shape: f32[1,128], index: 6, kind: input, shape index: {}]   ;;  %s1990_s7 = inlined_call_operand.hbm [shape: f32[128,128], index: 7, kind: input, shape index: {}]   ;;  %s1991_s8 = inlined_call_operand.vmem [shape: f32[1,128], index: 8, kind: input, shape index: {}]   ;;  %s1992_s9 = inlined_call_operand.hbm [shape: f32[64,128], index: 9, kind: output, shape index: {}]  }
   0x1   :  { %1999 = sst [smem:[#allocation18_spill]] %s1992_s9 }
   0x2   :  { %14 = vsyncpa [#allocation3], 0 }
   0x3   :  { %16 = vsyncpa [#allocation3 + $0x1], 0 }
   0x4   :  { %17 = vsyncpa [#allocation6], 0 }
   0x5   :  { %18 = vsyncpa [#allocation9], 0 }
   0x6   :  { %19 = vsyncpa [#allocation4], 0 }
   0x7   :  { %21 = vsyncpa [#allocation4 + $0x1], 0  ;;  %s1673_s30 = smov 0   ;;  %s1675_s10 = smov 0  }
   0x8   :  { %s1677_s11 = smov 0   ;;  %s1679_s12 = smov 0  }
   0x9 LB: > { %2000 = sst [smem:[#allocation16_spill]] %s1599_s30  ;;  %s1694_s13 = sadd.s32 4294967295, %s1611_s12   ;;  %s1611_s12 = sphi %s1679_s12, %s2023_s12   ;;  %s1607_s11 = sphi %s1677_s11, %s2022_s11   ;;  %s1603_s10 = sphi %s1675_s10, %s2021_s10   ;;  %s1599_s30 = sphi %s1673_s30, %s2020_s30  }
   0xa   : > { %s936_s14 = sadd.s32 4294967294, %s1611_s12   ;;  %p47_p0 = scmp.ne.s32.totalorder %s1603_s10, %s1599_s30 }
   0xb   : > { %p1993_p1 = scmp.eq.s32.totalorder %s1694_s13, 0  ;;  %p245_p3 = scmp.eq.s32.totalorder %s936_s14, 3 }
   0xc   : > { %p937_p5 = scmp.ge.s32.totalorder %s1611_s12, 1  ;;  %p252_p7 = scmp.lt.s32.totalorder %s1611_s12, 5 }
   0xd   : > { %p1703_p4 = por %p1993_p1, %p47_p0  ;;  %p1708_p6 = por %p245_p3, %p47_p0 }
   0xe   : > { %p1713_p8 = pnand %p937_p5, %p252_p7  ;;  %s1613_s18 = smov [#allocation5]  }
   0xf   : > { %s2001_s15 = scalar_select %p1703_p4, 1, 0 }
  0x10   : > { %s2002_s16 = scalar_select %p1708_p6, 1, 0 }
  0x11   : > { %s2004_s17 = scalar_select %p1713_p8, 1, 0 }
  0x12   : > { %2003 = sst [smem:[#allocation17_spill]] %s2002_s16  ;;  %s264_s19 = sshll.u32 %s1613_s18, 4  ;;  %s1717_s19 = int_to_ptr.vmem [resolvable:$true] %s264_s19 }
  0x13   : > { %p1324_p9 = pneg %p1713_p8  ;;  %s1614_s21 = smov [#allocation8]  }
  0x14   : > { %s296_s22 = sshll.u32 %s1614_s21, 4  ;;  %s1615_s23 = smov [#allocation7]   ;;  %s1727_s22 = int_to_ptr.vmem [resolvable:$true] %s296_s22 }
  0x15   : > { %p1723_p10 = pnand %p1324_p9, %p1993_p1  ;;  %s1729_s24 = sshll.u32 %s1615_s23, 4  ;;  %s281_s24 = int_to_ptr.vmem [resolvable:$true] %s1729_s24 }
  0x16   : > { %s1395_s27 = scalar_lea.hbm %s1984_s1, 2048 }
  0x17   : > { %p1396_p11 = scmp.ne.s32.totalorder %s1984_s1, %s1395_s27  ;;  %p1739_p12 = pneg %p1723_p10 }
  0x18   : > { %p1402_p3 = scmp.lt.u32.totalorder %s1395_s27, %s1984_s1 }
  0x19   : > { %p1398_p13 = pnand %p1739_p12, %p1396_p11 }
  0x1b   : > { %p1399_p0 = pneg %p1398_p13 }
  0x1d   : > { %p1404_p5 = pnand %p1402_p3, %p1399_p0 }
  0x1f   : > { %1407 = shalt.err (!%p1404_p5)
}
  0x20   : > { %s1408_s23 = scalar_lea.vmem %s1717_s19, 2048  ;;  %p1416_p2 = scmp.lt.s32.totalorder %s1717_s19, %s1717_s19 }
  0x21   : > { %p1409_p7 = scmp.ne.s32.totalorder %s1717_s19, %s1408_s23  ;;  %p1417_p6 = scmp.lt.s32.totalorder %s1408_s23, %s1408_s23 }
  0x23   : > { %p1411_p9 = pnand %p1409_p7, %p1739_p12  ;;  %p1418_p11 = por %p1417_p6, %p1416_p2 }
  0x25   : > { %p1412_p1 = pneg %p1411_p9 }
  0x27   : > { %p1419_p13 = pnand %p1418_p11, %p1412_p1 }
  0x29   : > { %1422 = shalt.err (!%p1419_p13)
}
  0x2a   : > { %s1616_s25 = smov 128   ;;  %s1617_s26 = smov 8  }
  0x2b   : > { %1327 = dma.hbm_to_vmem [thread:$0]  (!%p1723_p10), %s1984_s1, 2048, %s1717_s19, [#allocation6], %s1616_s25, %s1616_s25, %s1617_s26  }
  0x2c   : > { %s1423_s21 = scalar_lea.hbm %s1988_s5, 2048 }
  0x2d   : > { %p1424_p1 = scmp.ne.s32.totalorder %s1988_s5, %s1423_s21  ;;  %p1430_p0 = scmp.lt.u32.totalorder %s1423_s21, %s1988_s5 }
  0x2f   : > { %p1426_p2 = pnand %p1424_p1, %p1739_p12 }
  0x31   : > { %p1427_p6 = pneg %p1426_p2 }
  0x33   : > { %p1432_p3 = pnand %p1430_p0, %p1427_p6 }
  0x35   : > { %1435 = shalt.err (!%p1432_p3)
}
  0x36   : > { %s1436_s19 = scalar_lea.vmem %s1727_s22, 2048  ;;  %p1444_p11 = scmp.lt.s32.totalorder %s1727_s22, %s1727_s22 }
  0x37   : > { %p1437_p5 = scmp.ne.s32.totalorder %s1727_s22, %s1436_s19  ;;  %p1445_p13 = scmp.lt.s32.totalorder %s1436_s19, %s1436_s19 }
  0x39   : > { %p1439_p7 = pnand %p1437_p5, %p1739_p12  ;;  %p1446_p1 = por %p1445_p13, %p1444_p11 }
  0x3b   : > { %p1440_p9 = pneg %p1439_p7 }
  0x3d   : > { %p1447_p2 = pnand %p1446_p1, %p1440_p9 }
  0x3f   : > { %1450 = shalt.err (!%p1447_p2)
}
  0x40   : > { %1333 = dma.hbm_to_vmem [thread:$0]  (!%p1723_p10), %s1988_s5, 2048, %s1727_s22, [#allocation9], %s1616_s25, %s1616_s25, %s1617_s26  }
  0x41   : > { %s1451_s28 = scalar_lea.hbm %s1986_s3, 2048 }
  0x42   : > { %p1452_p6 = scmp.ne.s32.totalorder %s1986_s3, %s1451_s28  ;;  %p1458_p5 = scmp.lt.u32.totalorder %s1451_s28, %s1986_s3 }
  0x44   : > { %p1454_p0 = pnand %p1452_p6, %p1739_p12 }
  0x46   : > { %p1455_p3 = pneg %p1454_p0 }
  0x48   : > { %p1460_p7 = pnand %p1458_p5, %p1455_p3 }
  0x4a   : > { %1463 = shalt.err (!%p1460_p7)
}
  0x4b   : > { %s1464_s19 = scalar_lea.vmem %s281_s24, 2048  ;;  %p1472_p1 = scmp.lt.s32.totalorder %s281_s24, %s281_s24 }
  0x4c   : > { %p1465_p9 = scmp.ne.s32.totalorder %s281_s24, %s1464_s19  ;;  %p1473_p2 = scmp.lt.s32.totalorder %s1464_s19, %s1464_s19 }
  0x4e   : > { %p1467_p11 = pnand %p1465_p9, %p1739_p12  ;;  %p1474_p4 = por %p1473_p2, %p1472_p1 }
  0x50   : > { %p1468_p13 = pneg %p1467_p11 }
  0x52   : > { %p1475_p8 = pnand %p1474_p4, %p1468_p13 }
  0x54   : > { %1478 = shalt.err (!%p1475_p8)
}
  0x55   : > { %1330 = dma.hbm_to_vmem [thread:$0]  (!%p1723_p10), %s1986_s3, 2048, %s281_s24, [#allocation6], %s1616_s25, %s1616_s25, %s1617_s26  }
  0x56   : > { %s1618_s30 = smov [#allocation10]   ;;  %s1479_s29 = scalar_lea.hbm %s1990_s7, 2048 }
  0x57   : > { %s312_s16 = sshll.u32 %s1618_s30, 4  ;;  %p1480_p4 = scmp.ne.s32.totalorder %s1990_s7, %s1479_s29  ;;  %s313_s16 = int_to_ptr.vmem [resolvable:$true] %s312_s16 }
  0x58   : > { %p1486_p0 = scmp.lt.u32.totalorder %s1479_s29, %s1990_s7 }
  0x59   : > { %p1482_p8 = pnand %p1480_p4, %p1739_p12 }
  0x5b   : > { %p1483_p6 = pneg %p1482_p8 }
  0x5d   : > { %p1488_p3 = pnand %p1486_p0, %p1483_p6 }
  0x5f   : > { %1491 = shalt.err (!%p1488_p3)
}
  0x60   : > { %s1492_s24 = scalar_lea.vmem %s313_s16, 2048  ;;  %p1500_p11 = scmp.lt.s32.totalorder %s313_s16, %s313_s16 }
  0x61   : > { %p1493_p5 = scmp.ne.s32.totalorder %s313_s16, %s1492_s24  ;;  %p1501_p13 = scmp.lt.s32.totalorder %s1492_s24, %s1492_s24 }
  0x63   : > { %p1495_p7 = pnand %p1493_p5, %p1739_p12  ;;  %p1502_p1 = por %p1501_p13, %p1500_p11 }
  0x65   : > { %p1496_p9 = pneg %p1495_p7 }
  0x67   : > { %p1503_p2 = pnand %p1502_p1, %p1496_p9 }
  0x69   : > { %1506 = shalt.err (!%p1503_p2)
}
  0x6a   : > { %1336 = dma.hbm_to_vmem [thread:$0]  (!%p1723_p10), %s1990_s7, 2048, %s313_s16, [#allocation9], %s1616_s25, %s1616_s25, %s1617_s26  }
  0x6b   : > { %s1833_s14 = sadd.s32 1, %s1611_s12   ;;  %s34_s20 = sadd.s32 1, %s1607_s11 }
  0x6c   : > { %s31_s30 = ssub.s32 %s1611_s12, %s1833_s14  ;;  %p41_p12 = scmp.ne.s32.totalorder %s1607_s11, %s1603_s10 }
  0x6d   : > { %p32_p4 = scmp.eq.s32.totalorder %s31_s30, 0  ;;  %p42_p8 = scmp.eq.s32.totalorder %s1611_s12, 0 }
  0x6e   : > { %p2007_p6 = scmp.eq.s32.totalorder %s1694_s13, 3  ;;  %p1349_p3 = scmp.lt.s32.totalorder %s1611_s12, 4 }
  0x6f   : > { %s1849_s28 = scalar_select %p32_p4, %s1607_s11, %s34_s20  }
  0x70   : > { %p1843_p0 = por %p2007_p6, %p41_p12  ;;  %p43_p5 = por %p42_p8, %p41_p12 }
  0x71   : > { %s329_s29 = sand.u32 1, %s1607_s11   ;;  %s962_s16 = sshll.u32 %s1611_s12, 8 }
  0x72   : > { %s943_s18 = sshll.u32 %s329_s29, 4  ;;  %s1856_s19 = scalar_lea.hbm %s1983_s0, %s962_s16 }
  0x73   : > { %s333_s24 = scalar_lea.vmem [#allocation2], %s943_s18  ;;  %p1860_p10 = pnand %p1349_p3, %p43_p5 }
  0x74   : > { %s340_s22 = sshll.u32 %s333_s24, 4  ;;  %s1864_s20 = scalar_lea.sflag [#allocation3], %s329_s29  ;;  %s1858_s22 = int_to_ptr.vmem [resolvable:$true] %s340_s22 }
  0x75   : > { %s1507_s30 = scalar_lea.hbm %s1856_s19, 256  ;;  %p1509_p9 = pneg %p1860_p10 }
  0x76   : > { %p1508_p7 = scmp.ne.s32.totalorder %s1856_s19, %s1507_s30  ;;  %s1512_s21 = scalar_lea.hbm %s1983_s0, 1024 }
  0x77   : > { %p1513_p1 = scmp.lt.u32.totalorder %s1856_s19, %s1983_s0  ;;  %p1514_p2 = scmp.lt.u32.totalorder %s1512_s21, %s1507_s30 }
  0x78   : > { %p1510_p11 = pnand %p1509_p9, %p1508_p7  ;;  %p1516_p4 = scmp.lt.u32.totalorder %s1507_s30, %s1856_s19 }
  0x79   : > { %p1515_p12 = por %p1514_p2, %p1513_p1 }
  0x7a   : > { %p1511_p13 = pneg %p1510_p11 }
  0x7b   : > { %p1517_p8 = por %p1516_p4, %p1515_p12 }
  0x7d   : > { %p1518_p6 = pnand %p1517_p8, %p1511_p13 }
  0x7f   : > { %1521 = shalt.err (!%p1518_p6)
}
  0x80   : > { %s1522_s29 = scalar_lea.vmem %s1858_s22, 256  ;;  %s1619_s18 = smov [#allocation2]  }
  0x81   : > { %p1523_p3 = scmp.ne.s32.totalorder %s1858_s22, %s1522_s29  ;;  %s1527_s16 = sshll.u32 %s1619_s18, 4  ;;  %s1528_s16 = int_to_ptr.vmem [resolvable:$false] %s1527_s16 }
  0x82   : > { %s1529_s23 = scalar_lea.vmem %s1528_s16, 512  ;;  %p1530_p11 = scmp.lt.s32.totalorder %s1858_s22, %s1528_s16 }
  0x83   : > { %p1525_p5 = pnand %p1523_p3, %p1509_p9  ;;  %p1531_p1 = scmp.lt.s32.totalorder %s1529_s23, %s1522_s29 }
  0x85   : > { %p1526_p7 = pneg %p1525_p5  ;;  %p1532_p2 = por %p1531_p1, %p1530_p11 }
  0x87   : > { %p1533_p12 = pnand %p1532_p2, %p1526_p7 }
  0x89   : > { %1536 = shalt.err (!%p1533_p12)
}
  0x8a   : > { %1340 = dma.hbm_to_vmem [thread:$0]  (!%p1860_p10), %s1856_s19, 256, %s1858_s22, %s1864_s20, %s1616_s25, %s1616_s25, %s1617_s26  }
  0x8b   : > { %p2010_p9 = scmp.ne.s32.totalorder %s2004_s17, 0 }
  0x8c   : > { %s1898_s30 = sand.u32 (!%p2010_p9), 1, %s1603_s10   ;;  %p2011_p13 = scmp.ne.s32.totalorder (!%p2010_p9), %s2001_s15, 0 }
  0x8d   : > { %352 = sbr.rel (%p2010_p9) target bundleno = 1073 (0x431), region = 56  ;;  %s947_s21 = sshll.u32 (!%p2010_p9), %s1898_s30, 4 }
  0x8e   : > { %s355_s24 = scalar_lea.sflag (!%p2010_p9), [#allocation3], %s1898_s30  ;;  %s1904_s9 = scalar_lea.vmem (!%p2010_p9), [#allocation2], %s947_s21 }
  0x94   : > { %1582 = dma.done.wait (%p2011_p13), %s355_s24, 256  }
  0x95   : > { %1584 = vsyncadd (%p2011_p13), %s355_s24, 4294967040  ;;  %p2012_p10 = scmp.eq.s32.totalorder %s1694_s13, 0 }
  0x97   : > { %1586 = dma.done.wait (%p2012_p10), [#allocation6], 4096   ;;  %p2013_p4 = pmov %p2012_p10 }
  0x99   : > { %1588 = vsyncadd (%p2013_p4), [#allocation6], 4294963200  ;;  %p2014_p8 = pmov %p2013_p4 }
  0x9a   : > { %p2015_p6 = pmov %p2013_p4 }
  0x9b   : > { %1590 = dma.done.wait (%p2014_p8), [#allocation9], 4096  }
  0x9c   : > { %1592 = vsyncadd (%p2015_p6), [#allocation9], 4294963200  ;;  %v413_v0 = vld [vmem:[#allocation5] sm:$0xff]  ;;  %v414_v1 = vld [vmem:[#allocation5 + $0x8] sm:$0xff]  ;;  %s408_s20 = scalar_lea.vmem [#allocation11], %s947_s21  ;;  %s963_s23 = sshll.u32 %s1694_s13, 8 }
  0x9d   : > { %v415_v2 = vld [vmem:[#allocation5 + $0x10] sm:$0xff]  ;;  %v1176_v3 = vpack.c.bf16 %v414_v1, %v413_v0  ;;  %v416_v4 = vld [vmem:[#allocation5 + $0x18] sm:$0xff]  ;;  %v417_v6 = vld [vmem:[#allocation5 + $0x20] sm:$0xff]  ;;  %s825_s29 = sshll.u32 %s408_s20, 4  ;;  %s2016_s15 = sld [smem:[#allocation18_spill]]  ;;  %s1935_s29 = int_to_ptr.vmem [resolvable:$true] %s825_s29 }
  0x9e   : > { %v1180_v5 = vpack.c.bf16 %v416_v4, %v415_v2  ;;  %v418_v7 = vld [vmem:[#allocation5 + $0x28] sm:$0xff]  ;;  %v419_v9 = vld [vmem:[#allocation5 + $0x30] sm:$0xff]  ;;  %v420_v10 = vld [vmem:[#allocation5 + $0x38] sm:$0xff]  ;;  %s812_s21 = scalar_lea.sflag [#allocation4], %s1898_s30  ;;  %s1537_s25 = scalar_lea.vmem %s1935_s29, 256 }
  0x9f   : > { %1177 = vmatprep.subr.bf16.mxu0 %v1176_v3  ;;  %v1184_v8 = vpack.c.bf16 %v418_v7, %v417_v6  ;;  %v411_v11 = vld [vmem:[%s1904_s9] sm:$0xff]  ;;  %v512_v13 = vld [vmem:[#allocation7 + $0x8] sm:$0xff]  ;;  %v514_v16 = vld [vmem:[#allocation7 + $0x18] sm:$0xff]  ;;  %v1188_v20 = vpack.c.bf16 %v420_v10, %v419_v9  ;;  %p1538_p3 = scmp.ne.s32.totalorder %s1935_s29, %s1537_s25  ;;  %s1620_s13 = smov [#allocation11]  }
  0xa0   : > { %1179 = vmatpush3.bf16.msra.mxu0 %v1176_v3  ;;  %1068 = vmatprep.mubr.f32.mxu0 %v411_v11  ;;  %v511_v12 = vld [vmem:[#allocation7] sm:$0xff]  ;;  %v513_v14 = vld [vmem:[#allocation7 + $0x10] sm:$0xff]  ;;  %v516_v19 = vld [vmem:[#allocation7 + $0x28] sm:$0xff]  ;;  %s1541_s26 = sshll.u32 %s1620_s13, 4  ;;  %s1542_s26 = int_to_ptr.vmem [resolvable:$false] %s1541_s26 }
  0xa1   : > { %1181 = vmatprep.subr.bf16.mxu0 %v1180_v5  ;;  %v1208_v15 = vpack.c.bf16 %v512_v13, %v511_v12  ;;  %v1212_v17 = vpack.c.bf16 %v514_v16, %v513_v14  ;;  %v515_v18 = vld [vmem:[#allocation7 + $0x20] sm:$0xff]  ;;  %v422_v22 = vld [vmem:[#allocation5 + $0x48] sm:$0xff]  ;;  %v517_v24 = vld [vmem:[#allocation7 + $0x30] sm:$0xff]  ;;  %p1539_p5 = pnand %p1538_p3, %p1843_p0  ;;  %s1543_s19 = scalar_lea.vmem %s1542_s26, 512 }
  0xa2   : > { %v421_v21 = vld [vmem:[#allocation5 + $0x40] sm:$0xff]  ;;  %v1216_v23 = vpack.c.bf16 %v516_v19, %v515_v18  ;;  %v518_v25 = vld [vmem:[#allocation7 + $0x38] sm:$0xff]  ;;  %v423_v27 = vld [vmem:[#allocation5 + $0x50] sm:$0xff]  ;;  %p1544_p11 = scmp.lt.s32.totalorder %s1935_s29, %s1542_s26  ;;  %p1545_p1 = scmp.lt.s32.totalorder %s1543_s19, %s1537_s25 }
  0xa3   : > { %1209 = vmatprep.subr.bf16.mxu1 %v1208_v15  ;;  %v1192_v26 = vpack.c.bf16 %v422_v22, %v421_v21  ;;  %v424_v28 = vld [vmem:[#allocation5 + $0x58] sm:$0xff]  ;;  %v1220_v29 = vpack.c.bf16 %v518_v25, %v517_v24  ;;  %v519_v30 = vld [vmem:[#allocation7 + $0x40] sm:$0xff]  ;;  %v520_v31 = vld [vmem:[#allocation7 + $0x48] sm:$0xff]  ;;  %s1940_s17 = scalar_lea.hbm %s2016_s15, %s963_s23  ;;  %p1540_p7 = pneg %p1539_p5 }
  0xa4   : > { %1183 = vmatpush3.bf16.msra.mxu0 %v1180_v5  ;;  %1211 = vmatpush3.bf16.msra.mxu1 %v1208_v15  ;;  %v1196_v32 = vpack.c.bf16 %v424_v28, %v423_v27  ;;  %v425_v33 = vld [vmem:[#allocation5 + $0x60] sm:$0xff]  ;;  %v426_v34 = vld [vmem:[#allocation5 + $0x68] sm:$0xff]  ;;  %v1224_v35 = vpack.c.bf16 %v520_v31, %v519_v30  ;;  %v521_v36 = vld [vmem:[#allocation7 + $0x50] sm:$0xff]  ;;  %p1546_p2 = por %p1545_p1, %p1544_p11 }
  0xa5   : > { %1185 = vmatprep.subr.bf16.mxu0 %v1184_v8  ;;  %1213 = vmatprep.subr.bf16.mxu1 %v1212_v17  ;;  %v522_v37 = vld [vmem:[#allocation7 + $0x58] sm:$0xff]  ;;  %v1200_v38 = vpack.c.bf16 %v426_v34, %v425_v33  ;;  %v427_v39 = vld [vmem:[#allocation5 + $0x70] sm:$0xff]  ;;  %v523_v42 = vld [vmem:[#allocation7 + $0x60] sm:$0xff] }
  0xa6   : > { %v428_v40 = vld [vmem:[#allocation5 + $0x78] sm:$0xff]  ;;  %v1228_v41 = vpack.c.bf16 %v522_v37, %v521_v36  ;;  %v524_v43 = vld [vmem:[#allocation7 + $0x68] sm:$0xff]  ;;  %v525_v47 = vld [vmem:[#allocation7 + $0x70] sm:$0xff]  ;;  %p1547_p12 = pnand %p1546_p2, %p1540_p7 }
  0xa7   : > { %v1204_v44 = vpack.c.bf16 %v428_v40, %v427_v39  ;;  %v1232_v45 = vpack.c.bf16 %v524_v43, %v523_v42  ;;  %v412_v46 = vld [vmem:[%s1904_s9 + $0x8] sm:$0xff]  ;;  %v611_v50 = vld [vmem:[#allocation8] sm:$0xff]  ;;  %v613_v52 = vld [vmem:[#allocation8 + $0x10] sm:$0xff] }
  0xa8   : > { %1187 = vmatpush3.bf16.msra.mxu0 %v1184_v8  ;;  %1215 = vmatpush3.bf16.msra.mxu1 %v1212_v17  ;;  %v526_v48 = vld [vmem:[#allocation7 + $0x78] sm:$0xff]  ;;  %v612_v51 = vld [vmem:[#allocation8 + $0x8] sm:$0xff]  ;;  %v615_v56 = vld [vmem:[#allocation8 + $0x20] sm:$0xff] }
  0xa9   : > { %1189 = vmatprep.subr.bf16.mxu0 %v1188_v20  ;;  %1217 = vmatprep.subr.bf16.mxu1 %v1216_v23  ;;  %v1236_v49 = vpack.c.bf16 %v526_v48, %v525_v47  ;;  %v1240_v53 = vpack.c.bf16 %v612_v51, %v611_v50  ;;  %v614_v54 = vld [vmem:[#allocation8 + $0x18] sm:$0xff]  ;;  %v616_v57 = vld [vmem:[#allocation8 + $0x28] sm:$0xff]  ;;  %v617_v59 = vld [vmem:[#allocation8 + $0x30] sm:$0xff] }
  0xaa   : > { %v1244_v55 = vpack.c.bf16 %v614_v54, %v613_v52  ;;  %v1248_v58 = vpack.c.bf16 %v616_v57, %v615_v56  ;;  %v618_v60 = vld [vmem:[#allocation8 + $0x38] sm:$0xff]  ;;  %v619_v62 = vld [vmem:[#allocation8 + $0x40] sm:$0xff]  ;;  %v620_v63 = vld [vmem:[#allocation8 + $0x48] sm:$0xff] }
  0xab   : > { %v1252_v61 = vpack.c.bf16 %v618_v60, %v617_v59  ;;  %v1256_v0 = vpack.c.bf16 %v620_v63, %v619_v62  ;;  %v621_v1 = vld [vmem:[#allocation8 + $0x50] sm:$0xff]  ;;  %v622_v2 = vld [vmem:[#allocation8 + $0x58] sm:$0xff]  ;;  %v623_v4 = vld [vmem:[#allocation8 + $0x60] sm:$0xff] }
  0xac   : > { %1191 = vmatpush3.bf16.msra.mxu0 %v1188_v20  ;;  %1219 = vmatpush3.bf16.msra.mxu1 %v1216_v23  ;;  %v1260_v3 = vpack.c.bf16 %v622_v2, %v621_v1  ;;  %v624_v5 = vld [vmem:[#allocation8 + $0x68] sm:$0xff]  ;;  %v953_v7 = vld [vmem:[%s1985_s2] ss:$0 sm:$0xff]  ;;  %v625_v12 = vld [vmem:[#allocation8 + $0x70] sm:$0xff] }
  0xad   : > { %1193 = vmatprep.subr.bf16.mxu0 %v1192_v26  ;;  %1221 = vmatprep.subr.bf16.mxu1 %v1220_v29  ;;  %v1264_v6 = vpack.c.bf16 %v624_v5, %v623_v4  ;;  %v626_v13 = vld [vmem:[#allocation8 + $0x78] sm:$0xff]  ;;  %v711_v15 = vld [vmem:[#allocation10] sm:$0xff]  ;;  %v712_v16 = vld [vmem:[#allocation10 + $0x8] sm:$0xff] }
  0xae   : > { %v1268_v14 = vpack.c.bf16 %v626_v13, %v625_v12  ;;  %v713_v17 = vld [vmem:[#allocation10 + $0x10] sm:$0xff]  ;;  %v1272_v18 = vpack.c.bf16 %v712_v16, %v711_v15  ;;  %v714_v19 = vld [vmem:[#allocation10 + $0x18] sm:$0xff]  ;;  %v715_v21 = vld [vmem:[#allocation10 + $0x20] sm:$0xff] }
  0xaf   : > { %v1276_v20 = vpack.c.bf16 %v714_v19, %v713_v17  ;;  %v716_v22 = vld [vmem:[#allocation10 + $0x28] sm:$0xff]  ;;  %v717_v24 = vld [vmem:[#allocation10 + $0x30] sm:$0xff]  ;;  %v718_v25 = vld [vmem:[#allocation10 + $0x38] sm:$0xff] }
  0xb0   : > { %1195 = vmatpush3.bf16.msra.mxu0 %v1192_v26  ;;  %1223 = vmatpush3.bf16.msra.mxu1 %v1220_v29  ;;  %v1280_v23 = vpack.c.bf16 %v716_v22, %v715_v21  ;;  %v1284_v26 = vpack.c.bf16 %v718_v25, %v717_v24  ;;  %v719_v27 = vld [vmem:[#allocation10 + $0x40] sm:$0xff]  ;;  %v720_v28 = vld [vmem:[#allocation10 + $0x48] sm:$0xff]  ;;  %v721_v30 = vld [vmem:[#allocation10 + $0x50] sm:$0xff] }
  0xb1   : > { %1197 = vmatprep.subr.bf16.mxu0 %v1196_v32  ;;  %1225 = vmatprep.subr.bf16.mxu1 %v1224_v35  ;;  %v1288_v29 = vpack.c.bf16 %v720_v28, %v719_v27  ;;  %v722_v31 = vld [vmem:[#allocation10 + $0x58] sm:$0xff]  ;;  %v723_v33 = vld [vmem:[#allocation10 + $0x60] sm:$0xff]  ;;  %v724_v34 = vld [vmem:[#allocation10 + $0x68] sm:$0xff] }
  0xb2   : > { %v954_v36 = vld [vmem:[%s1987_s4] ss:$0 sm:$0xff]  ;;  %v725_v43 = vld [vmem:[#allocation10 + $0x70] sm:$0xff] }
  0xb4   : > { %1199 = vmatpush3.bf16.msra.mxu0 %v1196_v32  ;;  %1227 = vmatpush3.bf16.msra.mxu1 %v1224_v35  ;;  %v1292_v32 = vpack.c.bf16 %v722_v31, %v721_v30  ;;  %v1296_v35 = vpack.c.bf16 %v724_v34, %v723_v33 }
  0xb5   : > { %1201 = vmatprep.subr.bf16.mxu0 %v1200_v38  ;;  %1229 = vmatprep.subr.bf16.mxu1 %v1228_v41 }
  0xb8   : > { %1203 = vmatpush3.bf16.msra.mxu0 %v1200_v38  ;;  %1231 = vmatpush3.bf16.msra.mxu1 %v1228_v41 }
  0xb9   : > { %1205 = vmatprep.subr.bf16.mxu0 %v1204_v44  ;;  %1233 = vmatprep.subr.bf16.mxu1 %v1232_v45 }
  0xbc   : > { %1207 = vmatpush3.bf16.msra.mxu0 %v1204_v44  ;;  %1235 = vmatpush3.bf16.msra.mxu1 %v1232_v45  ;;  %v726_v44 = vld [vmem:[#allocation10 + $0x78] sm:$0xff] }
  0xbd   : > { %1237 = vmatprep.subr.bf16.mxu1 %v1236_v49  ;;  %1241 = vmatprep.subr.bf16.mxu0 %v1240_v53  ;;  %v1300_v45 = vpack.c.bf16 %v726_v44, %v725_v43 }
  0xbf   : > { %1069 = vmatmul.mubr.f32.vlgmr.msra.gmra.mrb[0].mxu0 %v412_v46  ;;  %v955_v46 = vld [vmem:[%s1989_s6] ss:$0 sm:$0xff] }
  0xc0   : > { %1239 = vmatpush3.bf16.msra.mxu1 %v1236_v49  ;;  %1243 = vmatpush3.bf16.msra.mxu0 %v1240_v53  ;;  %v956_v53 = vld [vmem:[%s1991_s8] ss:$0 sm:$0xff] }
  0xc1   : > { %1245 = vmatprep.subr.bf16.mxu0 %v1244_v55  ;;  %1273 = vmatprep.subr.bf16.mxu1 %v1272_v18 }
  0xc4   : > { %1247 = vmatpush3.bf16.msra.mxu0 %v1244_v55 }
  0xc5   : > { %1249 = vmatprep.subr.bf16.mxu0 %v1248_v58 }
  0xc8   : > { %1251 = vmatpush3.bf16.msra.mxu0 %v1248_v58 }
  0xc9   : > { %1253 = vmatprep.subr.bf16.mxu0 %v1252_v61 }
  0xcc   : > { %1255 = vmatpush3.bf16.msra.mxu0 %v1252_v61 }
  0xcd   : > { %1257 = vmatprep.subr.bf16.mxu0 %v1256_v0 }
  0xd0   : > { %1259 = vmatpush3.bf16.msra.mxu0 %v1256_v0 }
  0xd1   : > { %1261 = vmatprep.subr.bf16.mxu0 %v1260_v3 }
  0xd4   : > { %1263 = vmatpush3.bf16.msra.mxu0 %v1260_v3 }
  0xd5   : > { %1265 = vmatprep.subr.bf16.mxu0 %v1264_v6 }
  0xd8   : > { %1267 = vmatpush3.bf16.msra.mxu0 %v1264_v6 }
  0xd9   : > { %1269 = vmatprep.subr.bf16.mxu0 %v1268_v14 }
  0xdc   : > { %1271 = vmatpush3.bf16.msra.mxu0 %v1268_v14 }
 0x192   : > { %v1070_v8 = vpop.f32.mrb[0].mxu0 }
 0x193   : > { %v502_v9 = vpop.f32.mrb[1].mxu0  ;;  %v508_v11 = vadd.f32 %v1070_v8, %v953_v7 }
 0x194   : > { %v503_v10 = vadd.f32 %v953_v7, %v502_v9 }
 0x196   : > { %1103 = vmatprep.mubr.f32.mxu1 %v503_v10 }
 0x197   : > { %1104 = vmatmul.mubr.f32.vlgmr.msra.gmra.mrb[0].mxu1 %v508_v11 }
 0x198   : > { %1275 = vmatpush3.bf16.msra.mxu1 %v1272_v18 }
 0x199   : > { %1277 = vmatprep.subr.bf16.mxu1 %v1276_v20 }
 0x19c   : > { %1279 = vmatpush3.bf16.msra.mxu1 %v1276_v20 }
 0x19d   : > { %1281 = vmatprep.subr.bf16.mxu1 %v1280_v23 }
 0x1a0   : > { %1283 = vmatpush3.bf16.msra.mxu1 %v1280_v23 }
 0x1a1   : > { %1285 = vmatprep.subr.bf16.mxu1 %v1284_v26 }
 0x1a4   : > { %1287 = vmatpush3.bf16.msra.mxu1 %v1284_v26 }
 0x1a5   : > { %1289 = vmatprep.subr.bf16.mxu1 %v1288_v29 }
 0x1a8   : > { %1291 = vmatpush3.bf16.msra.mxu1 %v1288_v29 }
 0x1a9   : > { %1293 = vmatprep.subr.bf16.mxu1 %v1292_v32 }
 0x1ac   : > { %1295 = vmatpush3.bf16.msra.mxu1 %v1292_v32 }
 0x1ad   : > { %1297 = vmatprep.subr.bf16.mxu1 %v1296_v35 }
 0x1b0   : > { %1299 = vmatpush3.bf16.msra.mxu1 %v1296_v35 }
 0x1b1   : > { %1301 = vmatprep.subr.bf16.mxu1 %v1300_v45 }
 0x1b4   : > { %1303 = vmatpush3.bf16.msra.mxu1 %v1300_v45 }
 0x26a   : > { %v1105_v37 = vpop.f32.mrb[0].mxu1 }
 0x26b   : > { %v606_v38 = vadd.f32 %v1105_v37, %v954_v36  ;;  %v600_v39 = vpop.f32.mrb[1].mxu1 }
 0x26c   : > { %v601_v40 = vadd.f32 %v954_v36, %v600_v39 }
 0x26d   : > { %v610_v42 = vmax.f32 %v606_v38, 0.0 }
 0x26e   : > { %v609_v41 = vmax.f32 %v601_v40, 0.0 }
 0x270   : > { %1138 = vmatprep.mubr.f32.mxu0 %v609_v41 }
 0x271   : > { %1139 = vmatmul.mubr.f32.vlgmr.msra.gmra.mrb[2].mxu0 %v610_v42 }
 0x344   : > { %v1140_v47 = vpop.f32.mrb[2].mxu0 }
 0x345   : > { %v706_v48 = vadd.f32 %v1140_v47, %v955_v46  ;;  %v700_v49 = vpop.f32.mrb[3].mxu0 }
 0x346   : > { %v701_v50 = vadd.f32 %v955_v46, %v700_v49 }
 0x347   : > { %v710_v52 = vmax.f32 %v706_v48, 0.0 }
 0x348   : > { %v709_v51 = vmax.f32 %v701_v50, 0.0 }
 0x34a   : > { %1173 = vmatprep.mubr.f32.mxu1 %v709_v51 }
 0x34b   : > { %1174 = vmatmul.mubr.f32.vlgmr.msra.gmra.mrb[2].mxu1 %v710_v52 }
 0x41e   : > { %v1175_v54 = vpop.f32.mrb[2].mxu1 }
 0x41f   : > { %v806_v55 = vadd.f32 %v1175_v54, %v956_v53  ;;  %v800_v56 = vpop.f32.mrb[3].mxu1 }
 0x420   : > { %v801_v57 = vadd.f32 %v956_v53, %v800_v56 }
 0x421   : > { %810 = vst [vmem:[%s408_s20 + $0x8] sm:$0xff] %v806_v55 }
 0x422   : > { %809 = vst [vmem:[%s408_s20] sm:$0xff] %v801_v57 }
 0x423   : > { %1550 = shalt.err (!%p1547_p12)
}
 0x424   : > { %s1551_s22 = scalar_lea.hbm %s1940_s17, 256  ;;  %s1555_s16 = scalar_lea.hbm %s2016_s15, 1024 }
 0x425   : > { %p1552_p9 = scmp.ne.s32.totalorder %s1940_s17, %s1551_s22  ;;  %p1556_p4 = scmp.lt.u32.totalorder %s1940_s17, %s2016_s15 }
 0x426   : > { %p1557_p8 = scmp.lt.u32.totalorder %s1555_s16, %s1551_s22  ;;  %p1559_p3 = scmp.lt.u32.totalorder %s1551_s22, %s1940_s17 }
 0x427   : > { %p1553_p13 = pnand %p1552_p9, %p1843_p0 }
 0x428   : > { %p1558_p6 = por %p1557_p8, %p1556_p4 }
 0x429   : > { %p1554_p10 = pneg %p1553_p13 }
 0x42a   : > { %p1560_p5 = por %p1559_p3, %p1558_p6 }
 0x42c   : > { %p1561_p7 = pnand %p1560_p5, %p1554_p10 }
 0x42e   : > { %1564 = shalt.err (!%p1561_p7)
}
 0x42f   : > { %s1621_s9 = smov 128   ;;  %s1622_s25 = smov 8  }
 0x430   : > { %1322 = dma.vmem_to_hbm [thread:$0]  (%p1843_p0), %s1935_s29, 256, %s1940_s17, %s812_s21, %s1621_s9, %s1621_s9, %s1622_s25  }
 0x431 PF: > { %s2017_s13 = sld [smem:[#allocation16_spill]]  ;;  %s2018_s26 = sld [smem:[#allocation17_spill]] }
 0x432   : > { %p1354_p11 = scmp.ge.s32.totalorder %s1611_s12, 2 }
 0x437   : > { %s840_s19 = sand.u32 1, %s2017_s13   ;;  %p2019_p1 = scmp.ne.s32.totalorder %s2018_s26, 0 }
 0x438   : > { %s841_s22 = scalar_lea.sflag [#allocation4], %s840_s19 }
 0x439   : > { %p1342_p2 = pnand %p1354_p11, %p2019_p1 }
 0x43b   : > { %1594 = dma.done.wait (!%p1342_p2), %s841_s22, 256  }
 0x43c   : > { %1596 = vsyncadd (!%p1342_p2), %s841_s22, 4294967040  ;;  %p24_p12 = scmp.ge.s32.totalorder %s1833_s14, 6   ;;  %s2020_s30 = smov %s1603_s10 }
 0x43d   : > { %s2021_s10 = smov %s1607_s11  ;;  %s2022_s11 = smov %s1849_s28 }
 0x43e   : > { %s2023_s12 = smov %s1833_s14  ;;  %26 = sbr.rel (!%p24_p12) target bundleno = 9 (0x9), region = 117 }
 0x445   :  { %846 = vsyncpa [#allocation3], 1 }
 0x446   :  { %848 = vsyncpa [#allocation3 + $0x1], 1 }
 0x447   :  { %849 = vsyncpa [#allocation6], 1 }
 0x448   :  { %850 = vsyncpa [#allocation9], 1 }
 0x449   :  { %851 = vsyncpa [#allocation4], 1 }
 0x44a   :  { %853 = vsyncpa [#allocation4 + $0x1], 1 }

// kernel: tpu_custom_call.1
= control target key start
LH: loop header
LB: loop body
LE: loop exit
PB: predicated region body
PF: predicated region fallthrough
CT: control target
= control target key end

     0   :  { %s1983_s0 = inlined_call_operand.hbm [shape: f32[64,128], index: 0, kind: input, shape index: {}]   ;;  %s1984_s1 = inlined_call_operand.hbm [shape: f32[128,128], index: 1, kind: input, shape index: {}]   ;;  %s1985_s2 = inlined_call_operand.vmem [shape: f32[1,128], index: 2, kind: input, shape index: {}]   ;;  %s1986_s3 = inlined_call_operand.hbm [shape: f32[128,128], index: 3, kind: input, shape index: {}]   ;;  %s1987_s4 = inlined_call_operand.vmem [shape: f32[1,128], index: 4, kind: input, shape index: {}]   ;;  %s1988_s5 = inlined_call_operand.hbm [shape: f32[128,128], index: 5, kind: input, shape index: {}]   ;;  %s1989_s6 = inlined_call_operand.vmem [shape: f32[1,128], index: 6, kind: input, shape index: {}]   ;;  %s1990_s7 = inlined_call_operand.hbm [shape: f32[128,128], index: 7, kind: input, shape index: {}]   ;;  %s1991_s8 = inlined_call_operand.vmem [shape: f32[1,128], index: 8, kind: input, shape index: {}]   ;;  %s1992_s9 = inlined_call_operand.hbm [shape: f32[64,128], index: 9, kind: output, shape index: {}]  }
   0x1   :  { %1999 = sst [smem:[#allocation18_spill]] %s1992_s9 }
   0x2   :  { %14 = vsyncpa [#allocation3], 0 }
   0x3   :  { %16 = vsyncpa [#allocation3 + $0x1], 0 }
   0x4   :  { %17 = vsyncpa [#allocation6], 0 }
   0x5   :  { %18 = vsyncpa [#allocation9], 0 }
   0x6   :  { %19 = vsyncpa [#allocation4], 0 }
   0x7   :  { %21 = vsyncpa [#allocation4 + $0x1], 0  ;;  %s1673_s30 = smov 0   ;;  %s1675_s10 = smov 0  }
   0x8   :  { %s1677_s11 = smov 0   ;;  %s1679_s12 = smov 0  }
   0x9 LB: > { %2000 = sst [smem:[#allocation16_spill]] %s1599_s30  ;;  %s1694_s13 = sadd.s32 4294967295, %s1611_s12   ;;  %s1611_s12 = sphi %s1679_s12, %s2023_s12   ;;  %s1607_s11 = sphi %s1677_s11, %s2022_s11   ;;  %s1603_s10 = sphi %s1675_s10, %s2021_s10   ;;  %s1599_s30 = sphi %s1673_s30, %s2020_s30  }
   0xa   : > { %s936_s14 = sadd.s32 4294967294, %s1611_s12   ;;  %p47_p0 = scmp.ne.s32.totalorder %s1603_s10, %s1599_s30 }
   0xb   : > { %p1993_p1 = scmp.eq.s32.totalorder %s1694_s13, 0  ;;  %p245_p3 = scmp.eq.s32.totalorder %s936_s14, 3 }
   0xc   : > { %p937_p5 = scmp.ge.s32.totalorder %s1611_s12, 1  ;;  %p252_p7 = scmp.lt.s32.totalorder %s1611_s12, 5 }
   0xd   : > { %p1703_p4 = por %p1993_p1, %p47_p0  ;;  %p1708_p6 = por %p245_p3, %p47_p0 }
   0xe   : > { %p1713_p8 = pnand %p937_p5, %p252_p7  ;;  %s1613_s18 = smov [#allocation5]  }
   0xf   : > { %s2001_s15 = scalar_select %p1703_p4, 1, 0 }
  0x10   : > { %s2002_s16 = scalar_select %p1708_p6, 1, 0 }
  0x11   : > { %s2004_s17 = scalar_select %p1713_p8, 1, 0 }
  0x12   : > { %2003 = sst [smem:[#allocation17_spill]] %s2002_s16  ;;  %s264_s19 = sshll.u32 %s1613_s18, 4  ;;  %s1717_s19 = int_to_ptr.vmem [resolvable:$true] %s264_s19 }
  0x13   : > { %p1324_p9 = pneg %p1713_p8  ;;  %s1614_s21 = smov [#allocation8]  }
  0x14   : > { %s296_s22 = sshll.u32 %s1614_s21, 4  ;;  %s1615_s23 = smov [#allocation7]   ;;  %s1727_s22 = int_to_ptr.vmem [resolvable:$true] %s296_s22 }
  0x15   : > { %p1723_p10 = pnand %p1324_p9, %p1993_p1  ;;  %s1729_s24 = sshll.u32 %s1615_s23, 4  ;;  %s281_s24 = int_to_ptr.vmem [resolvable:$true] %s1729_s24 }
  0x16   : > { %s1395_s27 = scalar_lea.hbm %s1984_s1, 2048 }
  0x17   : > { %p1396_p11 = scmp.ne.s32.totalorder %s1984_s1, %s1395_s27  ;;  %p1739_p12 = pneg %p1723_p10 }
  0x18   : > { %p1402_p3 = scmp.lt.u32.totalorder %s1395_s27, %s1984_s1 }
  0x19   : > { %p1398_p13 = pnand %p1739_p12, %p1396_p11 }
  0x1b   : > { %p1399_p0 = pneg %p1398_p13 }
  0x1d   : > { %p1404_p5 = pnand %p1402_p3, %p1399_p0 }
  0x1f   : > { %1407 = shalt.err (!%p1404_p5)
}
  0x20   : > { %s1408_s23 = scalar_lea.vmem %s1717_s19, 2048  ;;  %p1416_p2 = scmp.lt.s32.totalorder %s1717_s19, %s1717_s19 }
  0x21   : > { %p1409_p7 = scmp.ne.s32.totalorder %s1717_s19, %s1408_s23  ;;  %p1417_p6 = scmp.lt.s32.totalorder %s1408_s23, %s1408_s23 }
  0x23   : > { %p1411_p9 = pnand %p1409_p7, %p1739_p12  ;;  %p1418_p11 = por %p1417_p6, %p1416_p2 }
  0x25   : > { %p1412_p1 = pneg %p1411_p9 }
  0x27   : > { %p1419_p13 = pnand %p1418_p11, %p1412_p1 }
  0x29   : > { %1422 = shalt.err (!%p1419_p13)
}
  0x2a   : > { %s1616_s25 = smov 128   ;;  %s1617_s26 = smov 8  }
  0x2b   : > { %1327 = dma.hbm_to_vmem [thread:$0]  (!%p1723_p10), %s1984_s1, 2048, %s1717_s19, [#allocation6], %s1616_s25, %s1616_s25, %s1617_s26  }
  0x2c   : > { %s1423_s21 = scalar_lea.hbm %s1988_s5, 2048 }
  0x2d   : > { %p1424_p1 = scmp.ne.s32.totalorder %s1988_s5, %s1423_s21  ;;  %p1430_p0 = scmp.lt.u32.totalorder %s1423_s21, %s1988_s5 }
  0x2f   : > { %p1426_p2 = pnand %p1424_p1, %p1739_p12 }
  0x31   : > { %p1427_p6 = pneg %p1426_p2 }
  0x33   : > { %p1432_p3 = pnand %p1430_p0, %p1427_p6 }
  0x35   : > { %1435 = shalt.err (!%p1432_p3)
}
  0x36   : > { %s1436_s19 = scalar_lea.vmem %s1727_s22, 2048  ;;  %p1444_p11 = scmp.lt.s32.totalorder %s1727_s22, %s1727_s22 }
  0x37   : > { %p1437_p5 = scmp.ne.s32.totalorder %s1727_s22, %s1436_s19  ;;  %p1445_p13 = scmp.lt.s32.totalorder %s1436_s19, %s1436_s19 }
  0x39   : > { %p1439_p7 = pnand %p1437_p5, %p1739_p12  ;;  %p1446_p1 = por %p1445_p13, %p1444_p11 }
  0x3b   : > { %p1440_p9 = pneg %p1439_p7 }
  0x3d   : > { %p1447_p2 = pnand %p1446_p1, %p1440_p9 }
  0x3f   : > { %1450 = shalt.err (!%p1447_p2)
}
  0x40   : > { %1333 = dma.hbm_to_vmem [thread:$0]  (!%p1723_p10), %s1988_s5, 2048, %s1727_s22, [#allocation9], %s1616_s25, %s1616_s25, %s1617_s26  }
  0x41   : > { %s1451_s28 = scalar_lea.hbm %s1986_s3, 2048 }
  0x42   : > { %p1452_p6 = scmp.ne.s32.totalorder %s1986_s3, %s1451_s28  ;;  %p1458_p5 = scmp.lt.u32.totalorder %s1451_s28, %s1986_s3 }
  0x44   : > { %p1454_p0 = pnand %p1452_p6, %p1739_p12 }
  0x46   : > { %p1455_p3 = pneg %p1454_p0 }
  0x48   : > { %p1460_p7 = pnand %p1458_p5, %p1455_p3 }
  0x4a   : > { %1463 = shalt.err (!%p1460_p7)
}
  0x4b   : > { %s1464_s19 = scalar_lea.vmem %s281_s24, 2048  ;;  %p1472_p1 = scmp.lt.s32.totalorder %s281_s24, %s281_s24 }
  0x4c   : > { %p1465_p9 = scmp.ne.s32.totalorder %s281_s24, %s1464_s19  ;;  %p1473_p2 = scmp.lt.s32.totalorder %s1464_s19, %s1464_s19 }
  0x4e   : > { %p1467_p11 = pnand %p1465_p9, %p1739_p12  ;;  %p1474_p4 = por %p1473_p2, %p1472_p1 }
  0x50   : > { %p1468_p13 = pneg %p1467_p11 }
  0x52   : > { %p1475_p8 = pnand %p1474_p4, %p1468_p13 }
  0x54   : > { %1478 = shalt.err (!%p1475_p8)
}
  0x55   : > { %1330 = dma.hbm_to_vmem [thread:$0]  (!%p1723_p10), %s1986_s3, 2048, %s281_s24, [#allocation6], %s1616_s25, %s1616_s25, %s1617_s26  }
  0x56   : > { %s1618_s30 = smov [#allocation10]   ;;  %s1479_s29 = scalar_lea.hbm %s1990_s7, 2048 }
  0x57   : > { %s312_s16 = sshll.u32 %s1618_s30, 4  ;;  %p1480_p4 = scmp.ne.s32.totalorder %s1990_s7, %s1479_s29  ;;  %s313_s16 = int_to_ptr.vmem [resolvable:$true] %s312_s16 }
  0x58   : > { %p1486_p0 = scmp.lt.u32.totalorder %s1479_s29, %s1990_s7 }
  0x59   : > { %p1482_p8 = pnand %p1480_p4, %p1739_p12 }
  0x5b   : > { %p1483_p6 = pneg %p1482_p8 }
  0x5d   : > { %p1488_p3 = pnand %p1486_p0, %p1483_p6 }
  0x5f   : > { %1491 = shalt.err (!%p1488_p3)
}
  0x60   : > { %s1492_s24 = scalar_lea.vmem %s313_s16, 2048  ;;  %p1500_p11 = scmp.lt.s32.totalorder %s313_s16, %s313_s16 }
  0x61   : > { %p1493_p5 = scmp.ne.s32.totalorder %s313_s16, %s1492_s24  ;;  %p1501_p13 = scmp.lt.s32.totalorder %s1492_s24, %s1492_s24 }
  0x63   : > { %p1495_p7 = pnand %p1493_p5, %p1739_p12  ;;  %p1502_p1 = por %p1501_p13, %p1500_p11 }
  0x65   : > { %p1496_p9 = pneg %p1495_p7 }
  0x67   : > { %p1503_p2 = pnand %p1502_p1, %p1496_p9 }
  0x69   : > { %1506 = shalt.err (!%p1503_p2)
}
  0x6a   : > { %1336 = dma.hbm_to_vmem [thread:$0]  (!%p1723_p10), %s1990_s7, 2048, %s313_s16, [#allocation9], %s1616_s25, %s1616_s25, %s1617_s26  }
  0x6b   : > { %s1833_s14 = sadd.s32 1, %s1611_s12   ;;  %s34_s20 = sadd.s32 1, %s1607_s11 }
  0x6c   : > { %s31_s30 = ssub.s32 %s1611_s12, %s1833_s14  ;;  %p41_p12 = scmp.ne.s32.totalorder %s1607_s11, %s1603_s10 }
  0x6d   : > { %p32_p4 = scmp.eq.s32.totalorder %s31_s30, 0  ;;  %p42_p8 = scmp.eq.s32.totalorder %s1611_s12, 0 }
  0x6e   : > { %p2007_p6 = scmp.eq.s32.totalorder %s1694_s13, 3  ;;  %p1349_p3 = scmp.lt.s32.totalorder %s1611_s12, 4 }
  0x6f   : > { %s1849_s28 = scalar_select %p32_p4, %s1607_s11, %s34_s20  }
  0x70   : > { %p1843_p0 = por %p2007_p6, %p41_p12  ;;  %p43_p5 = por %p42_p8, %p41_p12 }
  0x71   : > { %s329_s29 = sand.u32 1, %s1607_s11   ;;  %s962_s16 = sshll.u32 %s1611_s12, 8 }
  0x72   : > { %s943_s18 = sshll.u32 %s329_s29, 4  ;;  %s1856_s19 = scalar_lea.hbm %s1983_s0, %s962_s16 }
  0x73   : > { %s333_s24 = scalar_lea.vmem [#allocation2], %s943_s18  ;;  %p1860_p10 = pnand %p1349_p3, %p43_p5 }
  0x74   : > { %s340_s22 = sshll.u32 %s333_s24, 4  ;;  %s1864_s20 = scalar_lea.sflag [#allocation3], %s329_s29  ;;  %s1858_s22 = int_to_ptr.vmem [resolvable:$true] %s340_s22 }
  0x75   : > { %s1507_s30 = scalar_lea.hbm %s1856_s19, 256  ;;  %p1509_p9 = pneg %p1860_p10 }
  0x76   : > { %p1508_p7 = scmp.ne.s32.totalorder %s1856_s19, %s1507_s30  ;;  %s1512_s21 = scalar_lea.hbm %s1983_s0, 1024 }
  0x77   : > { %p1513_p1 = scmp.lt.u32.totalorder %s1856_s19, %s1983_s0  ;;  %p1514_p2 = scmp.lt.u32.totalorder %s1512_s21, %s1507_s30 }
  0x78   : > { %p1510_p11 = pnand %p1509_p9, %p1508_p7  ;;  %p1516_p4 = scmp.lt.u32.totalorder %s1507_s30, %s1856_s19 }
  0x79   : > { %p1515_p12 = por %p1514_p2, %p1513_p1 }
  0x7a   : > { %p1511_p13 = pneg %p1510_p11 }
  0x7b   : > { %p1517_p8 = por %p1516_p4, %p1515_p12 }
  0x7d   : > { %p1518_p6 = pnand %p1517_p8, %p1511_p13 }
  0x7f   : > { %1521 = shalt.err (!%p1518_p6)
}
  0x80   : > { %s1522_s29 = scalar_lea.vmem %s1858_s22, 256  ;;  %s1619_s18 = smov [#allocation2]  }
  0x81   : > { %p1523_p3 = scmp.ne.s32.totalorder %s1858_s22, %s1522_s29  ;;  %s1527_s16 = sshll.u32 %s1619_s18, 4  ;;  %s1528_s16 = int_to_ptr.vmem [resolvable:$false] %s1527_s16 }
  0x82   : > { %s1529_s23 = scalar_lea.vmem %s1528_s16, 512  ;;  %p1530_p11 = scmp.lt.s32.totalorder %s1858_s22, %s1528_s16 }
  0x83   : > { %p1525_p5 = pnand %p1523_p3, %p1509_p9  ;;  %p1531_p1 = scmp.lt.s32.totalorder %s1529_s23, %s1522_s29 }
  0x85   : > { %p1526_p7 = pneg %p1525_p5  ;;  %p1532_p2 = por %p1531_p1, %p1530_p11 }
  0x87   : > { %p1533_p12 = pnand %p1532_p2, %p1526_p7 }
  0x89   : > { %1536 = shalt.err (!%p1533_p12)
}
  0x8a   : > { %1340 = dma.hbm_to_vmem [thread:$0]  (!%p1860_p10), %s1856_s19, 256, %s1858_s22, %s1864_s20, %s1616_s25, %s1616_s25, %s1617_s26  }
  0x8b   : > { %p2010_p9 = scmp.ne.s32.totalorder %s2004_s17, 0 }
  0x8c   : > { %s1898_s30 = sand.u32 (!%p2010_p9), 1, %s1603_s10   ;;  %p2011_p13 = scmp.ne.s32.totalorder (!%p2010_p9), %s2001_s15, 0 }
  0x8d   : > { %352 = sbr.rel (%p2010_p9) target bundleno = 1073 (0x431), region = 56  ;;  %s947_s21 = sshll.u32 (!%p2010_p9), %s1898_s30, 4 }
  0x8e   : > { %s355_s24 = scalar_lea.sflag (!%p2010_p9), [#allocation3], %s1898_s30  ;;  %s1904_s9 = scalar_lea.vmem (!%p2010_p9), [#allocation2], %s947_s21 }
  0x94   : > { %1582 = dma.done.wait (%p2011_p13), %s355_s24, 256  }
  0x95   : > { %1584 = vsyncadd (%p2011_p13), %s355_s24, 4294967040  ;;  %p2012_p10 = scmp.eq.s32.totalorder %s1694_s13, 0 }
  0x97   : > { %1586 = dma.done.wait (%p2012_p10), [#allocation6], 4096   ;;  %p2013_p4 = pmov %p2012_p10 }
  0x99   : > { %1588 = vsyncadd (%p2013_p4), [#allocation6], 4294963200  ;;  %p2014_p8 = pmov %p2013_p4 }
  0x9a   : > { %p2015_p6 = pmov %p2013_p4 }
  0x9b   : > { %1590 = dma.done.wait (%p2014_p8), [#allocation9], 4096  }
  0x9c   : > { %1592 = vsyncadd (%p2015_p6), [#allocation9], 4294963200  ;;  %v413_v0 = vld [vmem:[#allocation5] sm:$0xff]  ;;  %v414_v1 = vld [vmem:[#allocation5 + $0x8] sm:$0xff]  ;;  %s408_s20 = scalar_lea.vmem [#allocation11], %s947_s21  ;;  %s963_s23 = sshll.u32 %s1694_s13, 8 }
  0x9d   : > { %v415_v2 = vld [vmem:[#allocation5 + $0x10] sm:$0xff]  ;;  %v1176_v3 = vpack.c.bf16 %v414_v1, %v413_v0  ;;  %v416_v4 = vld [vmem:[#allocation5 + $0x18] sm:$0xff]  ;;  %v417_v6 = vld [vmem:[#allocation5 + $0x20] sm:$0xff]  ;;  %s825_s29 = sshll.u32 %s408_s20, 4  ;;  %s2016_s15 = sld [smem:[#allocation18_spill]]  ;;  %s1935_s29 = int_to_ptr.vmem [resolvable:$true] %s825_s29 }
  0x9e   : > { %v1180_v5 = vpack.c.bf16 %v416_v4, %v415_v2  ;;  %v418_v7 = vld [vmem:[#allocation5 + $0x28] sm:$0xff]  ;;  %v419_v9 = vld [vmem:[#allocation5 + $0x30] sm:$0xff]  ;;  %v420_v10 = vld [vmem:[#allocation5 + $0x38] sm:$0xff]  ;;  %s812_s21 = scalar_lea.sflag [#allocation4], %s1898_s30  ;;  %s1537_s25 = scalar_lea.vmem %s1935_s29, 256 }
  0x9f   : > { %1177 = vmatprep.subr.bf16.mxu0 %v1176_v3  ;;  %v1184_v8 = vpack.c.bf16 %v418_v7, %v417_v6  ;;  %v411_v11 = vld [vmem:[%s1904_s9] sm:$0xff]  ;;  %v512_v13 = vld [vmem:[#allocation7 + $0x8] sm:$0xff]  ;;  %v514_v16 = vld [vmem:[#allocation7 + $0x18] sm:$0xff]  ;;  %v1188_v20 = vpack.c.bf16 %v420_v10, %v419_v9  ;;  %p1538_p3 = scmp.ne.s32.totalorder %s1935_s29, %s1537_s25  ;;  %s1620_s13 = smov [#allocation11]  }
  0xa0   : > { %1179 = vmatpush3.bf16.msra.mxu0 %v1176_v3  ;;  %1068 = vmatprep.mubr.f32.mxu0 %v411_v11  ;;  %v511_v12 = vld [vmem:[#allocation7] sm:$0xff]  ;;  %v513_v14 = vld [vmem:[#allocation7 + $0x10] sm:$0xff]  ;;  %v516_v19 = vld [vmem:[#allocation7 + $0x28] sm:$0xff]  ;;  %s1541_s26 = sshll.u32 %s1620_s13, 4  ;;  %s1542_s26 = int_to_ptr.vmem [resolvable:$false] %s1541_s26 }
  0xa1   : > { %1181 = vmatprep.subr.bf16.mxu0 %v1180_v5  ;;  %v1208_v15 = vpack.c.bf16 %v512_v13, %v511_v12  ;;  %v1212_v17 = vpack.c.bf16 %v514_v16, %v513_v14  ;;  %v515_v18 = vld [vmem:[#allocation7 + $0x20] sm:$0xff]  ;;  %v422_v22 = vld [vmem:[#allocation5 + $0x48] sm:$0xff]  ;;  %v517_v24 = vld [vmem:[#allocation7 + $0x30] sm:$0xff]  ;;  %p1539_p5 = pnand %p1538_p3, %p1843_p0  ;;  %s1543_s19 = scalar_lea.vmem %s1542_s26, 512 }
  0xa2   : > { %v421_v21 = vld [vmem:[#allocation5 + $0x40] sm:$0xff]  ;;  %v1216_v23 = vpack.c.bf16 %v516_v19, %v515_v18  ;;  %v518_v25 = vld [vmem:[#allocation7 + $0x38] sm:$0xff]  ;;  %v423_v27 = vld [vmem:[#allocation5 + $0x50] sm:$0xff]  ;;  %p1544_p11 = scmp.lt.s32.totalorder %s1935_s29, %s1542_s26  ;;  %p1545_p1 = scmp.lt.s32.totalorder %s1543_s19, %s1537_s25 }
  0xa3   : > { %1209 = vmatprep.subr.bf16.mxu1 %v1208_v15  ;;  %v1192_v26 = vpack.c.bf16 %v422_v22, %v421_v21  ;;  %v424_v28 = vld [vmem:[#allocation5 + $0x58] sm:$0xff]  ;;  %v1220_v29 = vpack.c.bf16 %v518_v25, %v517_v24  ;;  %v519_v30 = vld [vmem:[#allocation7 + $0x40] sm:$0xff]  ;;  %v520_v31 = vld [vmem:[#allocation7 + $0x48] sm:$0xff]  ;;  %s1940_s17 = scalar_lea.hbm %s2016_s15, %s963_s23  ;;  %p1540_p7 = pneg %p1539_p5 }
  0xa4   : > { %1183 = vmatpush3.bf16.msra.mxu0 %v1180_v5  ;;  %1211 = vmatpush3.bf16.msra.mxu1 %v1208_v15  ;;  %v1196_v32 = vpack.c.bf16 %v424_v28, %v423_v27  ;;  %v425_v33 = vld [vmem:[#allocation5 + $0x60] sm:$0xff]  ;;  %v426_v34 = vld [vmem:[#allocation5 + $0x68] sm:$0xff]  ;;  %v1224_v35 = vpack.c.bf16 %v520_v31, %v519_v30  ;;  %v521_v36 = vld [vmem:[#allocation7 + $0x50] sm:$0xff]  ;;  %p1546_p2 = por %p1545_p1, %p1544_p11 }
  0xa5   : > { %1185 = vmatprep.subr.bf16.mxu0 %v1184_v8  ;;  %1213 = vmatprep.subr.bf16.mxu1 %v1212_v17  ;;  %v522_v37 = vld [vmem:[#allocation7 + $0x58] sm:$0xff]  ;;  %v1200_v38 = vpack.c.bf16 %v426_v34, %v425_v33  ;;  %v427_v39 = vld [vmem:[#allocation5 + $0x70] sm:$0xff]  ;;  %v523_v42 = vld [vmem:[#allocation7 + $0x60] sm:$0xff] }
  0xa6   : > { %v428_v40 = vld [vmem:[#allocation5 + $0x78] sm:$0xff]  ;;  %v1228_v41 = vpack.c.bf16 %v522_v37, %v521_v36  ;;  %v524_v43 = vld [vmem:[#allocation7 + $0x68] sm:$0xff]  ;;  %v525_v47 = vld [vmem:[#allocation7 + $0x70] sm:$0xff]  ;;  %p1547_p12 = pnand %p1546_p2, %p1540_p7 }
  0xa7   : > { %v1204_v44 = vpack.c.bf16 %v428_v40, %v427_v39  ;;  %v1232_v45 = vpack.c.bf16 %v524_v43, %v523_v42  ;;  %v412_v46 = vld [vmem:[%s1904_s9 + $0x8] sm:$0xff]  ;;  %v611_v50 = vld [vmem:[#allocation8] sm:$0xff]  ;;  %v613_v52 = vld [vmem:[#allocation8 + $0x10] sm:$0xff] }
  0xa8   : > { %1187 = vmatpush3.bf16.msra.mxu0 %v1184_v8  ;;  %1215 = vmatpush3.bf16.msra.mxu1 %v1212_v17  ;;  %v526_v48 = vld [vmem:[#allocation7 + $0x78] sm:$0xff]  ;;  %v612_v51 = vld [vmem:[#allocation8 + $0x8] sm:$0xff]  ;;  %v615_v56 = vld [vmem:[#allocation8 + $0x20] sm:$0xff] }
  0xa9   : > { %1189 = vmatprep.subr.bf16.mxu0 %v1188_v20  ;;  %1217 = vmatprep.subr.bf16.mxu1 %v1216_v23  ;;  %v1236_v49 = vpack.c.bf16 %v526_v48, %v525_v47  ;;  %v1240_v53 = vpack.c.bf16 %v612_v51, %v611_v50  ;;  %v614_v54 = vld [vmem:[#allocation8 + $0x18] sm:$0xff]  ;;  %v616_v57 = vld [vmem:[#allocation8 + $0x28] sm:$0xff]  ;;  %v617_v59 = vld [vmem:[#allocation8 + $0x30] sm:$0xff] }
  0xaa   : > { %v1244_v55 = vpack.c.bf16 %v614_v54, %v613_v52  ;;  %v1248_v58 = vpack.c.bf16 %v616_v57, %v615_v56  ;;  %v618_v60 = vld [vmem:[#allocation8 + $0x38] sm:$0xff]  ;;  %v619_v62 = vld [vmem:[#allocation8 + $0x40] sm:$0xff]  ;;  %v620_v63 = vld [vmem:[#allocation8 + $0x48] sm:$0xff] }
  0xab   : > { %v1252_v61 = vpack.c.bf16 %v618_v60, %v617_v59  ;;  %v1256_v0 = vpack.c.bf16 %v620_v63, %v619_v62  ;;  %v621_v1 = vld [vmem:[#allocation8 + $0x50] sm:$0xff]  ;;  %v622_v2 = vld [vmem:[#allocation8 + $0x58] sm:$0xff]  ;;  %v623_v4 = vld [vmem:[#allocation8 + $0x60] sm:$0xff] }
  0xac   : > { %1191 = vmatpush3.bf16.msra.mxu0 %v1188_v20  ;;  %1219 = vmatpush3.bf16.msra.mxu1 %v1216_v23  ;;  %v1260_v3 = vpack.c.bf16 %v622_v2, %v621_v1  ;;  %v624_v5 = vld [vmem:[#allocation8 + $0x68] sm:$0xff]  ;;  %v953_v7 = vld [vmem:[%s1985_s2] ss:$0 sm:$0xff]  ;;  %v625_v12 = vld [vmem:[#allocation8 + $0x70] sm:$0xff] }
  0xad   : > { %1193 = vmatprep.subr.bf16.mxu0 %v1192_v26  ;;  %1221 = vmatprep.subr.bf16.mxu1 %v1220_v29  ;;  %v1264_v6 = vpack.c.bf16 %v624_v5, %v623_v4  ;;  %v626_v13 = vld [vmem:[#allocation8 + $0x78] sm:$0xff]  ;;  %v711_v15 = vld [vmem:[#allocation10] sm:$0xff]  ;;  %v712_v16 = vld [vmem:[#allocation10 + $0x8] sm:$0xff] }
  0xae   : > { %v1268_v14 = vpack.c.bf16 %v626_v13, %v625_v12  ;;  %v713_v17 = vld [vmem:[#allocation10 + $0x10] sm:$0xff]  ;;  %v1272_v18 = vpack.c.bf16 %v712_v16, %v711_v15  ;;  %v714_v19 = vld [vmem:[#allocation10 + $0x18] sm:$0xff]  ;;  %v715_v21 = vld [vmem:[#allocation10 + $0x20] sm:$0xff] }
  0xaf   : > { %v1276_v20 = vpack.c.bf16 %v714_v19, %v713_v17  ;;  %v716_v22 = vld [vmem:[#allocation10 + $0x28] sm:$0xff]  ;;  %v717_v24 = vld [vmem:[#allocation10 + $0x30] sm:$0xff]  ;;  %v718_v25 = vld [vmem:[#allocation10 + $0x38] sm:$0xff] }
  0xb0   : > { %1195 = vmatpush3.bf16.msra.mxu0 %v1192_v26  ;;  %1223 = vmatpush3.bf16.msra.mxu1 %v1220_v29  ;;  %v1280_v23 = vpack.c.bf16 %v716_v22, %v715_v21  ;;  %v1284_v26 = vpack.c.bf16 %v718_v25, %v717_v24  ;;  %v719_v27 = vld [vmem:[#allocation10 + $0x40] sm:$0xff]  ;;  %v720_v28 = vld [vmem:[#allocation10 + $0x48] sm:$0xff]  ;;  %v721_v30 = vld [vmem:[#allocation10 + $0x50] sm:$0xff] }
  0xb1   : > { %1197 = vmatprep.subr.bf16.mxu0 %v1196_v32  ;;  %1225 = vmatprep.subr.bf16.mxu1 %v1224_v35  ;;  %v1288_v29 = vpack.c.bf16 %v720_v28, %v719_v27  ;;  %v722_v31 = vld [vmem:[#allocation10 + $0x58] sm:$0xff]  ;;  %v723_v33 = vld [vmem:[#allocation10 + $0x60] sm:$0xff]  ;;  %v724_v34 = vld [vmem:[#allocation10 + $0x68] sm:$0xff] }
  0xb2   : > { %v954_v36 = vld [vmem:[%s1987_s4] ss:$0 sm:$0xff]  ;;  %v725_v43 = vld [vmem:[#allocation10 + $0x70] sm:$0xff] }
  0xb4   : > { %1199 = vmatpush3.bf16.msra.mxu0 %v1196_v32  ;;  %1227 = vmatpush3.bf16.msra.mxu1 %v1224_v35  ;;  %v1292_v32 = vpack.c.bf16 %v722_v31, %v721_v30  ;;  %v1296_v35 = vpack.c.bf16 %v724_v34, %v723_v33 }
  0xb5   : > { %1201 = vmatprep.subr.bf16.mxu0 %v1200_v38  ;;  %1229 = vmatprep.subr.bf16.mxu1 %v1228_v41 }
  0xb8   : > { %1203 = vmatpush3.bf16.msra.mxu0 %v1200_v38  ;;  %1231 = vmatpush3.bf16.msra.mxu1 %v1228_v41 }
  0xb9   : > { %1205 = vmatprep.subr.bf16.mxu0 %v1204_v44  ;;  %1233 = vmatprep.subr.bf16.mxu1 %v1232_v45 }
  0xbc   : > { %1207 = vmatpush3.bf16.msra.mxu0 %v1204_v44  ;;  %1235 = vmatpush3.bf16.msra.mxu1 %v1232_v45  ;;  %v726_v44 = vld [vmem:[#allocation10 + $0x78] sm:$0xff] }
  0xbd   : > { %1237 = vmatprep.subr.bf16.mxu1 %v1236_v49  ;;  %1241 = vmatprep.subr.bf16.mxu0 %v1240_v53  ;;  %v1300_v45 = vpack.c.bf16 %v726_v44, %v725_v43 }
  0xbf   : > { %1069 = vmatmul.mubr.f32.vlgmr.msra.gmra.mrb[0].mxu0 %v412_v46  ;;  %v955_v46 = vld [vmem:[%s1989_s6] ss:$0 sm:$0xff] }
  0xc0   : > { %1239 = vmatpush3.bf16.msra.mxu1 %v1236_v49  ;;  %1243 = vmatpush3.bf16.msra.mxu0 %v1240_v53  ;;  %v956_v53 = vld [vmem:[%s1991_s8] ss:$0 sm:$0xff] }
  0xc1   : > { %1245 = vmatprep.subr.bf16.mxu0 %v1244_v55  ;;  %1273 = vmatprep.subr.bf16.mxu1 %v1272_v18 }
  0xc4   : > { %1247 = vmatpush3.bf16.msra.mxu0 %v1244_v55 }
  0xc5   : > { %1249 = vmatprep.subr.bf16.mxu0 %v1248_v58 }
  0xc8   : > { %1251 = vmatpush3.bf16.msra.mxu0 %v1248_v58 }
  0xc9   : > { %1253 = vmatprep.subr.bf16.mxu0 %v1252_v61 }
  0xcc   : > { %1255 = vmatpush3.bf16.msra.mxu0 %v1252_v61 }
  0xcd   : > { %1257 = vmatprep.subr.bf16.mxu0 %v1256_v0 }
  0xd0   : > { %1259 = vmatpush3.bf16.msra.mxu0 %v1256_v0 }
  0xd1   : > { %1261 = vmatprep.subr.bf16.mxu0 %v1260_v3 }
  0xd4   : > { %1263 = vmatpush3.bf16.msra.mxu0 %v1260_v3 }
  0xd5   : > { %1265 = vmatprep.subr.bf16.mxu0 %v1264_v6 }
  0xd8   : > { %1267 = vmatpush3.bf16.msra.mxu0 %v1264_v6 }
  0xd9   : > { %1269 = vmatprep.subr.bf16.mxu0 %v1268_v14 }
  0xdc   : > { %1271 = vmatpush3.bf16.msra.mxu0 %v1268_v14 }
 0x192   : > { %v1070_v8 = vpop.f32.mrb[0].mxu0 }
 0x193   : > { %v502_v9 = vpop.f32.mrb[1].mxu0  ;;  %v508_v11 = vadd.f32 %v1070_v8, %v953_v7 }
 0x194   : > { %v503_v10 = vadd.f32 %v953_v7, %v502_v9 }
 0x196   : > { %1103 = vmatprep.mubr.f32.mxu1 %v503_v10 }
 0x197   : > { %1104 = vmatmul.mubr.f32.vlgmr.msra.gmra.mrb[0].mxu1 %v508_v11 }
 0x198   : > { %1275 = vmatpush3.bf16.msra.mxu1 %v1272_v18 }
 0x199   : > { %1277 = vmatprep.subr.bf16.mxu1 %v1276_v20 }
 0x19c   : > { %1279 = vmatpush3.bf16.msra.mxu1 %v1276_v20 }
 0x19d   : > { %1281 = vmatprep.subr.bf16.mxu1 %v1280_v23 }
 0x1a0   : > { %1283 = vmatpush3.bf16.msra.mxu1 %v1280_v23 }
 0x1a1   : > { %1285 = vmatprep.subr.bf16.mxu1 %v1284_v26 }
 0x1a4   : > { %1287 = vmatpush3.bf16.msra.mxu1 %v1284_v26 }
 0x1a5   : > { %1289 = vmatprep.subr.bf16.mxu1 %v1288_v29 }
 0x1a8   : > { %1291 = vmatpush3.bf16.msra.mxu1 %v1288_v29 }
 0x1a9   : > { %1293 = vmatprep.subr.bf16.mxu1 %v1292_v32 }
 0x1ac   : > { %1295 = vmatpush3.bf16.msra.mxu1 %v1292_v32 }
 0x1ad   : > { %1297 = vmatprep.subr.bf16.mxu1 %v1296_v35 }
 0x1b0   : > { %1299 = vmatpush3.bf16.msra.mxu1 %v1296_v35 }
 0x1b1   : > { %1301 = vmatprep.subr.bf16.mxu1 %v1300_v45 }
 0x1b4   : > { %1303 = vmatpush3.bf16.msra.mxu1 %v1300_v45 }
 0x26a   : > { %v1105_v37 = vpop.f32.mrb[0].mxu1 }
 0x26b   : > { %v606_v38 = vadd.f32 %v1105_v37, %v954_v36  ;;  %v600_v39 = vpop.f32.mrb[1].mxu1 }
 0x26c   : > { %v601_v40 = vadd.f32 %v954_v36, %v600_v39 }
 0x26d   : > { %v610_v42 = vmax.f32 %v606_v38, 0.0 }
 0x26e   : > { %v609_v41 = vmax.f32 %v601_v40, 0.0 }
 0x270   : > { %1138 = vmatprep.mubr.f32.mxu0 %v609_v41 }
 0x271   : > { %1139 = vmatmul.mubr.f32.vlgmr.msra.gmra.mrb[2].mxu0 %v610_v42 }
 0x344   : > { %v1140_v47 = vpop.f32.mrb[2].mxu0 }
 0x345   : > { %v706_v48 = vadd.f32 %v1140_v47, %v955_v46  ;;  %v700_v49 = vpop.f32.mrb[3].mxu0 }
 0x346   : > { %v701_v50 = vadd.f32 %v955_v46, %v700_v49 }
 0x347   : > { %v710_v52 = vmax.f32 %v706_v48, 0.0 }
 0x348   : > { %v709_v51 = vmax.f32 %v701_v50, 0.0 }
 0x34a   : > { %1173 = vmatprep.mubr.f32.mxu1 %v709_v51 }
 0x34b   : > { %1174 = vmatmul.mubr.f32.vlgmr.msra.gmra.mrb[2].mxu1 %v710_v52 }
 0x41e   : > { %v1175_v54 = vpop.f32.mrb[2].mxu1 }
 0x41f   : > { %v806_v55 = vadd.f32 %v1175_v54, %v956_v53  ;;  %v800_v56 = vpop.f32.mrb[3].mxu1 }
 0x420   : > { %v801_v57 = vadd.f32 %v956_v53, %v800_v56 }
 0x421   : > { %810 = vst [vmem:[%s408_s20 + $0x8] sm:$0xff] %v806_v55 }
 0x422   : > { %809 = vst [vmem:[%s408_s20] sm:$0xff] %v801_v57 }
 0x423   : > { %1550 = shalt.err (!%p1547_p12)
}
 0x424   : > { %s1551_s22 = scalar_lea.hbm %s1940_s17, 256  ;;  %s1555_s16 = scalar_lea.hbm %s2016_s15, 1024 }
 0x425   : > { %p1552_p9 = scmp.ne.s32.totalorder %s1940_s17, %s1551_s22  ;;  %p1556_p4 = scmp.lt.u32.totalorder %s1940_s17, %s2016_s15 }
 0x426   : > { %p1557_p8 = scmp.lt.u32.totalorder %s1555_s16, %s1551_s22  ;;  %p1559_p3 = scmp.lt.u32.totalorder %s1551_s22, %s1940_s17 }
 0x427   : > { %p1553_p13 = pnand %p1552_p9, %p1843_p0 }
 0x428   : > { %p1558_p6 = por %p1557_p8, %p1556_p4 }
 0x429   : > { %p1554_p10 = pneg %p1553_p13 }
 0x42a   : > { %p1560_p5 = por %p1559_p3, %p1558_p6 }
 0x42c   : > { %p1561_p7 = pnand %p1560_p5, %p1554_p10 }
 0x42e   : > { %1564 = shalt.err (!%p1561_p7)
}
 0x42f   : > { %s1621_s9 = smov 128   ;;  %s1622_s25 = smov 8  }
 0x430   : > { %1322 = dma.vmem_to_hbm [thread:$0]  (%p1843_p0), %s1935_s29, 256, %s1940_s17, %s812_s21, %s1621_s9, %s1621_s9, %s1622_s25  }
 0x431 PF: > { %s2017_s13 = sld [smem:[#allocation16_spill]]  ;;  %s2018_s26 = sld [smem:[#allocation17_spill]] }
 0x432   : > { %p1354_p11 = scmp.ge.s32.totalorder %s1611_s12, 2 }
 0x437   : > { %s840_s19 = sand.u32 1, %s2017_s13   ;;  %p2019_p1 = scmp.ne.s32.totalorder %s2018_s26, 0 }
 0x438   : > { %s841_s22 = scalar_lea.sflag [#allocation4], %s840_s19 }
 0x439   : > { %p1342_p2 = pnand %p1354_p11, %p2019_p1 }
 0x43b   : > { %1594 = dma.done.wait (!%p1342_p2), %s841_s22, 256  }
 0x43c   : > { %1596 = vsyncadd (!%p1342_p2), %s841_s22, 4294967040  ;;  %p24_p12 = scmp.ge.s32.totalorder %s1833_s14, 6   ;;  %s2020_s30 = smov %s1603_s10 }
 0x43d   : > { %s2021_s10 = smov %s1607_s11  ;;  %s2022_s11 = smov %s1849_s28 }
 0x43e   : > { %s2023_s12 = smov %s1833_s14  ;;  %26 = sbr.rel (!%p24_p12) target bundleno = 9 (0x9), region = 117 }
 0x445   :  { %846 = vsyncpa [#allocation3], 1 }
 0x446   :  { %848 = vsyncpa [#allocation3 + $0x1], 1 }
 0x447   :  { %849 = vsyncpa [#allocation6], 1 }
 0x448   :  { %850 = vsyncpa [#allocation9], 1 }
 0x449   :  { %851 = vsyncpa [#allocation4], 1 }
 0x44a   :  { %853 = vsyncpa [#allocation4 + $0x1], 1 }

</bundles_post_ra>
